<compile_context>
chip_gen: v7x
topology: tpu7x:2x2x1
jax: 0.10.0
libtpu: 0.0.40
codegen_flags: <defaults>
</compile_context>

<pallas_src>
import jax
import jax.numpy as jnp
from jax.experimental import pallas as pl
from jax.experimental.pallas import tpu as pltpu


def ffn_kernel(x_ref, w1_ref, b1_ref, w2_ref, b2_ref, o_ref, acc_ref):
    """One (tm, d_model) output tile; d_ff chunks stream through the reduction axis."""
    # All grid queries at the top level (NOT inside pl.when bodies).
    k = pl.program_id(1)
    k_last = pl.num_programs(1) - 1

    @pl.when(k == 0)
    def _init():
        acc_ref[...] = jnp.zeros_like(acc_ref)

    # Cast activations to the weight compute dtype in-kernel (no extra HBM pass).
    x = x_ref[...].astype(w1_ref.dtype)

    # GEMM 1: (tm, d_model) @ (d_model, tff) -> (tm, tff), f32 MXU accumulate.
    h = jnp.dot(x, w1_ref[...], preferred_element_type=jnp.float32)
    h = jnp.maximum(h + b1_ref[...], 0.0)          # bias + ReLU in f32 on the VPU
    # TODO(synk): nn.Dropout is identity in eval/inference mode; training-mode
    # dropout (pltpu.prng_seed / prng_random_bits masking) intentionally omitted.

    # GEMM 2: (tm, tff) @ (tff, d_model), accumulated into f32 VMEM scratch.
    acc_ref[...] += jnp.dot(h.astype(w2_ref.dtype), w2_ref[...],
                            preferred_element_type=jnp.float32)

    @pl.when(k == k_last)
    def _finalize():
        o_ref[...] = (acc_ref[...] + b2_ref[...]).astype(o_ref.dtype)


def _tile_candidates(dim: int, pref: int):
    """Valid tile sizes for `dim`: aligned divisors (256-, then 128-aligned), plus dim."""
    for align in (256, 128):
        if dim >= align and dim % align == 0:
            cands = [t for t in range(align, dim, align) if dim % t == 0]
            cands.append(dim)
            ok = [c for c in cands if c <= pref]
            return (ok[-1] if ok else cands[0]), cands
    # dim too small / not 128-aligned: use the full dimension as a single block.
    return dim, [dim]


def _footprint_bytes(tm, tff, d_model, x_item, w_item, out_item):
    """True VMEM footprint: double-buffered input/output tiles + f32 accumulator."""
    dbl = 2 * (tm * d_model * x_item          # x tile (native dtype, cast in-kernel)
               + d_model * tff * w_item       # W1 ff-chunk
               + tff * 4                      # b1 ff-chunk (f32)
               + tff * d_model * w_item       # W2 ff-chunk
               + d_model * 4                  # b2 (f32)
               + tm * d_model * out_item)     # output tile
    return dbl + tm * d_model * 4             # f32 accumulator (single-buffered)


def feed_forward(x, w1, b1, w2, b2, *, tm=512, tff=1024,
                 vmem_budget_bytes=44 * 1024 * 1024):
    """
    Args:
      x : (seq, d_model)
      w1: (d_model, d_ff)  -- ideally pre-converted to bf16 outside the hot path
      b1: (1, d_ff)
      w2: (d_ff, d_model)  -- ideally pre-converted to bf16 outside the hot path
      b2: (1, d_model)
    Returns:
      o : (seq, d_model), dtype of x.
    """
    seq, d_model = x.shape
    d_ff = w1.shape[1]
    assert w1.shape == (d_model, d_ff)
    assert w2.shape == (d_ff, d_model)
    assert b1.shape == (1, d_ff) and b2.shape == (1, d_model)

    # Biases are tiny; keep them f32 for the VPU adds.
    b1 = b1.astype(jnp.float32)
    b2 = b2.astype(jnp.float32)

    tm, tm_cands = _tile_candidates(seq, tm)
    tff, tff_cands = _tile_candidates(d_ff, tff)

    x_item = jnp.dtype(x.dtype).itemsize
    w_item = jnp.dtype(w1.dtype).itemsize
    out_item = x_item

    # Shrink tiles until the true footprint fits the per-generation-safe budget
    # (default 44 MiB, safe on v7x's 64 MiB VMEM; raise on v5e/v6e for bigger tm).
    def fp(tm_, tff_):
        return _footprint_bytes(tm_, tff_, d_model, x_item, w_item, out_item)

    while fp(tm, tff) > vmem_budget_bytes:
        smaller_tff = [c for c in tff_cands if c < tff]
        smaller_tm = [c for c in tm_cands if c < tm]
        if smaller_tff:
            tff = smaller_tff[-1]
        elif smaller_tm:
            tm = smaller_tm[-1]
        else:
            break

    grid = (seq // tm, d_ff // tff)
    footprint = fp(tm, tff)
    vmem_limit = int(max(32 * 1024 * 1024, footprint + 2 * 1024 * 1024))

    flops = 4 * seq * d_model * d_ff                      # two matmuls, 2 flops/MAC
    bytes_accessed = (seq * d_model * x_item              # x (read once)
                      + d_model * d_ff * w_item           # W1 (read once)
                      + d_ff * d_model * w_item           # W2 (read once)
                      + (d_ff + d_model) * 4              # biases
                      + seq * d_model * out_item)         # output

    return pl.pallas_call(
        ffn_kernel,
        out_shape=jax.ShapeDtypeStruct((seq, d_model), x.dtype),
        grid=grid,
        in_specs=[
            pl.BlockSpec((tm, d_model), lambda i, k: (i, 0)),    # x tile
            pl.BlockSpec((d_model, tff), lambda i, k: (0, k)),   # W1 ff-chunk
            pl.BlockSpec((1, tff), lambda i, k: (0, k)),         # b1 ff-chunk
            pl.BlockSpec((tff, d_model), lambda i, k: (k, 0)),   # W2 ff-chunk
            pl.BlockSpec((1, d_model), lambda i, k: (0, 0)),     # b2 (full width)
        ],
        out_specs=pl.BlockSpec((tm, d_model), lambda i, k: (i, 0)),
        scratch_shapes=[pltpu.VMEM((tm, d_model), jnp.float32)],
        compiler_params=pltpu.CompilerParams(
            dimension_semantics=("parallel", "arbitrary"),
            vmem_limit_bytes=vmem_limit,
        ),
        cost_estimate=pl.CostEstimate(flops=flops, transcendentals=0,
                                      bytes_accessed=bytes_accessed),
    )(x, w1, b1, w2, b2)


def feed_forward_ref(x, w1, b1, w2, b2):
    """Pure-JAX f32 reference for correctness checking."""
    h = jnp.maximum(x @ w1 + b1, 0.0)
    return h @ w2 + b2


if __name__ == "__main__":
    # Small but lane-aligned shapes; tm=256/tff=512 below give a (2, 2) grid so
    # both the parallel seq axis and the ff reduction/accumulator path are exercised.
    seq, d_model, d_ff = 512, 256, 1024

    key = jax.random.PRNGKey(0)
    kx, k1, kb1, k2, kb2 = jax.random.split(key, 5)

    x  = jax.random.normal(kx, (seq, d_model), dtype=jnp.float32)
    # Parameters shaped like nn.Linear(d_model, d_ff) / nn.Linear(d_ff, d_model),
    # stored pre-transposed for x @ W.
    w1 = jax.random.normal(k1,  (d_model, d_ff), dtype=jnp.float32) * 0.05
    b1 = jax.random.normal(kb1, (1, d_ff),       dtype=jnp.float32) * 0.05
    w2 = jax.random.normal(k2,  (d_ff, d_model), dtype=jnp.float32) * 0.05
    b2 = jax.random.normal(kb2, (1, d_model),    dtype=jnp.float32) * 0.05

    # One-time weight conversion to bf16 (outside the hot path, per perf review).
    w1_c = w1.astype(jnp.bfloat16)
    w2_c = w2.astype(jnp.bfloat16)

    out = feed_forward(x, w1_c, b1, w2_c, b2, tm=256, tff=512)
    out = jax.block_until_ready(out)

    ref = feed_forward_ref(x, w1, b1, w2, b2)
    assert out.shape == x.shape, (out.shape, x.shape)
    # bf16 weights / activations on the MXU (f32 accumulation) vs f32 reference.
    assert jnp.allclose(out, ref, atol=3e-2, rtol=3e-2), "mismatch vs reference"

    print("KERNEL_OK")
</pallas_src>

<mosaic_0001>
module attributes {stable_mosaic.version = 11 : i64} {
  func.func @ffn_kernel(%arg0: i32, %arg1: i32, %arg2: memref<256x256xf32, #tpu.memory_space<vmem>>, %arg3: memref<256x512xbf16, #tpu.memory_space<vmem>>, %arg4: memref<1x512xf32, #tpu.memory_space<vmem>>, %arg5: memref<512x256xbf16, #tpu.memory_space<vmem>>, %arg6: memref<1x256xf32, #tpu.memory_space<vmem>>, %arg7: memref<256x256xf32, #tpu.memory_space<vmem>>, %arg8: memref<256x256xf32, #tpu.memory_space<vmem>>) attributes {dimension_semantics = [#tpu.dimension_semantics<parallel>, #tpu.dimension_semantics<arbitrary>], iteration_bounds = array<i64: 2, 2>, scalar_prefetch = 0 : i64, scratch_operands = 1 : i64, tpu.core_type = #tpu.core_type<tc>, window_params = [{transform_indices = @transform_0, window_bounds = array<i64: 256, 256>}, {transform_indices = @transform_1, window_bounds = array<i64: 256, 512>}, {transform_indices = @transform_2, window_bounds = array<i64: 1, 512>}, {transform_indices = @transform_3, window_bounds = array<i64: 512, 256>}, {pipeline_mode = #tpu.pipeline_mode<synchronous>, transform_indices = @transform_4, window_bounds = array<i64: 1, 256>}, {transform_indices = @transform_5, window_bounds = array<i64: 256, 256>}]} {
    %c0_i32 = arith.constant 0 : i32
    %0 = arith.cmpi eq, %arg1, %c0_i32 : i32
    %1 = arith.extui %0 : i1 to i32
    %c0_i32_0 = arith.constant 0 : i32
    %2 = arith.cmpi ne, %1, %c0_i32_0 : i32
    scf.if %2 {
      %cst_15 = arith.constant 0.000000e+00 : f32
      %21 = vector.broadcast %cst_15 : f32 to vector<256x256xf32>
      %c0_16 = arith.constant 0 : index
      %c0_17 = arith.constant 0 : index
      %22 = vector.load %arg8[%c0_16, %c0_17] : memref<256x256xf32, #tpu.memory_space<vmem>>, vector<256x256xf32>
      tpu.vector_store %arg8[%c0_16, %c0_17], %21 {strides = array<i32>} : memref<256x256xf32, #tpu.memory_space<vmem>>, vector<256x256xf32>,
    } else {
    }
    %c0 = arith.constant 0 : index
    %c0_1 = arith.constant 0 : index
    %3 = vector.load %arg2[%c0, %c0_1] : memref<256x256xf32, #tpu.memory_space<vmem>>, vector<256x256xf32>
    %4 = arith.truncf %3 : vector<256x256xf32> to vector<256x256xbf16>
    %c0_2 = arith.constant 0 : index
    %c0_3 = arith.constant 0 : index
    %5 = vector.load %arg3[%c0_2, %c0_3] : memref<256x512xbf16, #tpu.memory_space<vmem>>, vector<256x512xbf16>
    %cst = arith.constant dense<0.000000e+00> : vector<256x512xf32>
    %6 = tpu.matmul %4, %5, %cst {dimension_numbers = #tpu.dot_dimension_numbers<[1], [0], [0], [1], [0, 0, 1, 1], [], []>} : vector<256x256xbf16>, vector<256x512xbf16>, vector<256x512xf32> -> vector<256x512xf32>
    %c0_4 = arith.constant 0 : index
    %c0_5 = arith.constant 0 : index
    %7 = vector.load %arg4[%c0_4, %c0_5] : memref<1x512xf32, #tpu.memory_space<vmem>>, vector<1x512xf32>
    %8 = vector.broadcast %7 : vector<1x512xf32> to vector<256x512xf32>
    %9 = arith.addf %6, %8 : vector<256x512xf32>
    %cst_6 = arith.constant 0.000000e+00 : f32
    %10 = vector.broadcast %cst_6 : f32 to vector<256x512xf32>
    %11 = arith.maximumf %9, %10 : vector<256x512xf32>
    %c0_7 = arith.constant 0 : index
    %c0_8 = arith.constant 0 : index
    %12 = vector.load %arg8[%c0_7, %c0_8] : memref<256x256xf32, #tpu.memory_space<vmem>>, vector<256x256xf32>
    %13 = arith.truncf %11 : vector<256x512xf32> to vector<256x512xbf16>
    %c0_9 = arith.constant 0 : index
    %c0_10 = arith.constant 0 : index
    %14 = vector.load %arg5[%c0_9, %c0_10] : memref<512x256xbf16, #tpu.memory_space<vmem>>, vector<512x256xbf16>
    %cst_11 = arith.constant dense<0.000000e+00> : vector<256x256xf32>
    %15 = tpu.matmul %13, %14, %cst_11 {dimension_numbers = #tpu.dot_dimension_numbers<[1], [0], [0], [1], [0, 0, 1, 1], [], []>} : vector<256x512xbf16>, vector<512x256xbf16>, vector<256x256xf32> -> vector<256x256xf32>
    %16 = arith.addf %12, %15 : vector<256x256xf32>
    %c0_12 = arith.constant 0 : index
    %c0_13 = arith.constant 0 : index
    %17 = vector.load %arg8[%c0_12, %c0_13] : memref<256x256xf32, #tpu.memory_space<vmem>>, vector<256x256xf32>
    tpu.vector_store %arg8[%c0_12, %c0_13], %16 {strides = array<i32>} : memref<256x256xf32, #tpu.memory_space<vmem>>, vector<256x256xf32>,
    %c1_i32 = arith.constant 1 : i32
    %18 = arith.cmpi eq, %arg1, %c1_i32 : i32
    %19 = arith.extui %18 : i1 to i32
    %c0_i32_14 = arith.constant 0 : i32
    %20 = arith.cmpi ne, %19, %c0_i32_14 : i32
    scf.if %20 {
      %c0_15 = arith.constant 0 : index
      %c0_16 = arith.constant 0 : index
      %21 = vector.load %arg8[%c0_15, %c0_16] : memref<256x256xf32, #tpu.memory_space<vmem>>, vector<256x256xf32>
      %c0_17 = arith.constant 0 : index
      %c0_18 = arith.constant 0 : index
      %22 = vector.load %arg6[%c0_17, %c0_18] : memref<1x256xf32, #tpu.memory_space<vmem>>, vector<1x256xf32>
      %23 = vector.broadcast %22 : vector<1x256xf32> to vector<256x256xf32>
      %24 = arith.addf %21, %23 : vector<256x256xf32>
      %c0_19 = arith.constant 0 : index
      %c0_20 = arith.constant 0 : index
      %25 = vector.load %arg7[%c0_19, %c0_20] : memref<256x256xf32, #tpu.memory_space<vmem>>, vector<256x256xf32>
      tpu.vector_store %arg7[%c0_19, %c0_20], %24 {strides = array<i32>} : memref<256x256xf32, #tpu.memory_space<vmem>>, vector<256x256xf32>,
    } else {
    }
    return
  }
  func.func @transform_0(%arg0: i32, %arg1: i32) -> (i32, i32) {
    %c0_i32 = arith.constant 0 : i32
    %c0_i32_0 = arith.constant 0 : i32
    return %arg0, %c0_i32 : i32, i32
  }
  func.func @transform_1(%arg0: i32, %arg1: i32) -> (i32, i32) {
    %c0_i32 = arith.constant 0 : i32
    %c0_i32_0 = arith.constant 0 : i32
    return %c0_i32, %arg1 : i32, i32
  }
  func.func @transform_2(%arg0: i32, %arg1: i32) -> (i32, i32) {
    %c0_i32 = arith.constant 0 : i32
    %c0_i32_0 = arith.constant 0 : i32
    return %c0_i32, %arg1 : i32, i32
  }
  func.func @transform_3(%arg0: i32, %arg1: i32) -> (i32, i32) {
    %c0_i32 = arith.constant 0 : i32
    %c0_i32_0 = arith.constant 0 : i32
    return %arg1, %c0_i32 : i32, i32
  }
  func.func @transform_4(%arg0: i32, %arg1: i32) -> (i32, i32) {
    %c0_i32 = arith.constant 0 : i32
    %c0_i32_0 = arith.constant 0 : i32
    %c0_i32_1 = arith.constant 0 : i32
    return %c0_i32, %c0_i32_0 : i32, i32
  }
  func.func @transform_5(%arg0: i32, %arg1: i32) -> (i32, i32) {
    %c0_i32 = arith.constant 0 : i32
    %c0_i32_0 = arith.constant 0 : i32
    return %arg0, %c0_i32 : i32, i32
  }
}

</mosaic_0001>

<bundles_post_ra>
// kernel: tpu_custom_call.1
= control target key start
LH: loop header
LB: loop body
LE: loop exit
PB: predicated region body
PF: predicated region fallthrough
CT: control target
= control target key end

     0   :  { %s4786_s0 = inlined_call_operand.hbm [shape: f32[512,256], index: 0, kind: input, shape index: {}]   ;;  %s4787_s1 = inlined_call_operand.hbm [shape: bf16[256,1024], index: 1, kind: input, shape index: {}]   ;;  %s4788_s2 = inlined_call_operand.hbm [shape: f32[1,1024], index: 2, kind: input, shape index: {}]   ;;  %s4789_s3 = inlined_call_operand.hbm [shape: bf16[1024,256], index: 3, kind: input, shape index: {}]   ;;  %s4790_s4 = inlined_call_operand.vmem [shape: f32[1,256], index: 4, kind: input, shape index: {}]   ;;  %s4791_s5 = inlined_call_operand.hbm [shape: f32[512,256], index: 5, kind: output, shape index: {}]  }
   0x1   :  { %4810 = sst [smem:[#allocation25_spill]] %s4787_s1 }
   0x2   :  { %4811 = sst [smem:[#allocation26_spill]] %s4790_s4 }
   0x3   :  { %4812 = sst [smem:[#allocation27_spill]] %s4791_s5 }
   0x4   :  { %10 = vsyncpa [#allocation4], 0 }
   0x5   :  { %12 = vsyncpa [#allocation4 + $0x1], 0 }
   0x6   :  { %13 = vsyncpa [#allocation7], 0 }
   0x7   :  { %15 = vsyncpa [#allocation7 + $0x1], 0 }
   0x8   :  { %16 = vsyncpa [#allocation10], 0 }
   0x9   :  { %18 = vsyncpa [#allocation10 + $0x1], 0 }
   0xa   :  { %19 = vsyncpa [#allocation5], 0 }
   0xb   :  { %21 = vsyncpa [#allocation5 + $0x1], 0  ;;  %s3704_s18 = smov 0   ;;  %s3706_s19 = smov 0  }
   0xc   :  { %s3708_s20 = smov 0   ;;  %s3710_s21 = smov 0  }
   0xd   :  { %s3712_s22 = smov 0   ;;  %s3714_s23 = smov 0  }
   0xe   :  { %s3716_s24 = smov 0   ;;  %s3718_s25 = smov 0  }
   0xf   :  { %s3720_s26 = smov 0   ;;  %s3722_s27 = smov 0  }
  0x10   :  { %s3724_s28 = smov 0  }
  0x11 LB: > { %4813 = sst [smem:[#allocation16_spill]] %s3627_s20  ;;  %p4794_p0 = scmp.eq.s32.totalorder %s3659_s28, 0  ;;  %s3659_s28 = sphi %s3724_s28, %s27_s28   ;;  %s3655_s27 = sphi %s3722_s27, %s4858_s27   ;;  %s3651_s26 = sphi %s3720_s26, %s4865_s26   ;;  %s3647_s25 = sphi %s3718_s25, %s4856_s25   ;;  %s3643_s24 = sphi %s3716_s24, %s4864_s24   ;;  %s3639_s23 = sphi %s3714_s23, %s4855_s23   ;;  %s3635_s22 = sphi %s3712_s22, %s4863_s22   ;;  %s3631_s21 = sphi %s3710_s21, %s4862_s21   ;;  %s3627_s20 = sphi %s3708_s20, %s4861_s20   ;;  %s3623_s19 = sphi %s3706_s19, %s4860_s19   ;;  %s3619_s18 = sphi %s3704_s18, %s4859_s18  }
  0x12   : > { %4814 = sst [smem:[#allocation17_spill]] %s3639_s23  ;;  %p79_p1 = scmp.ne.s32.totalorder %s3627_s20, %s3623_s19 }
  0x13   : > { %4815 = sst [smem:[#allocation18_spill]] %s3647_s25  ;;  %p4793_p3 = scmp.lt.s32.totalorder %s3659_s28, 4 }
  0x14   : > { %4816 = sst [smem:[#allocation19_spill]] %s3655_s27  ;;  %p81_p4 = por %p79_p1, %p4794_p0 }
  0x15   : > { %s233_s30 = sand.u32 1, %s3659_s28   ;;  %s3770_s6 = sand.u32 1, %s3627_s20  }
  0x16   : > { %s4792_s7 = sshll.u32 %s3770_s6, 9  ;;  %s3022_s8 = sshll.u32 %s3651_s26, 8 }
  0x17   : > { %s4817_s1 = sld [smem:[#allocation25_spill]]  ;;  %s237_s12 = scalar_lea.vmem [#allocation6], %s4792_s7 }
  0x18   : > { %s244_s13 = sshll.u32 %s237_s12, 4  ;;  %p3783_p5 = pnand %p4793_p3, %p81_p4  ;;  %s3787_s13 = int_to_ptr.vmem [resolvable:$true] %s244_s13 }
  0x19   : > { %s3790_s15 = scalar_lea.sflag [#allocation7], %s233_s30 }
  0x1a   : > { %s4818_s14 = scalar_select %p3783_p5, 1, 0 }
  0x1b   : > { %p3796_p8 = pneg %p3783_p5 }
  0x1d   : > { %s3777_s11 = scalar_lea.hbm %s4817_s1, %s3022_s8  ;;  %s3414_s10 = scalar_lea.hbm %s4817_s1, 16384 }
  0x1e   : > { %s3409_s16 = scalar_lea.hbm %s3777_s11, 8192  ;;  %p3415_p11 = scmp.lt.u32.totalorder %s3777_s11, %s4817_s1 }
  0x1f   : > { %p3410_p7 = scmp.ne.s32.totalorder %s3777_s11, %s3409_s16  ;;  %p3416_p12 = scmp.lt.u32.totalorder %s3414_s10, %s3409_s16 }
  0x20   : > { %p3418_p1 = scmp.lt.u32.totalorder %s3409_s16, %s3777_s11 }
  0x21   : > { %p3412_p9 = pnand %p3796_p8, %p3410_p7  ;;  %p3417_p13 = por %p3416_p12, %p3415_p11 }
  0x23   : > { %p3413_p10 = pneg %p3412_p9  ;;  %p3419_p4 = por %p3418_p1, %p3417_p13 }
  0x25   : > { %p3420_p3 = pnand %p3419_p4, %p3413_p10 }
  0x27   : > { %3423 = shalt.err (!%p3420_p3)
}
  0x28   : > { %s3424_s30 = scalar_lea.vmem %s3787_s13, 8192  ;;  %s3661_s8 = smov [#allocation6]  }
  0x29   : > { %p3425_p7 = scmp.ne.s32.totalorder %s3787_s13, %s3424_s30  ;;  %s3429_s9 = sshll.u32 %s3661_s8, 4  ;;  %s3430_s9 = int_to_ptr.vmem [resolvable:$false] %s3429_s9 }
  0x2a   : > { %s3431_s7 = scalar_lea.vmem %s3430_s9, 16384  ;;  %p3432_p0 = scmp.lt.s32.totalorder %s3787_s13, %s3430_s9 }
  0x2b   : > { %p3427_p9 = pnand %p3425_p7, %p3796_p8  ;;  %p3433_p6 = scmp.lt.s32.totalorder %s3431_s7, %s3424_s30 }
  0x2d   : > { %p3428_p2 = pneg %p3427_p9  ;;  %p3434_p11 = por %p3433_p6, %p3432_p0 }
  0x2f   : > { %p3435_p12 = pnand %p3434_p11, %p3428_p2 }
  0x31   : > { %3438 = shalt.err (!%p3435_p12)
}
  0x32   : > { %s3662_s16 = smov 512   ;;  %s4795_s10 = smov 256  }
  0x33   : > { %s4796_s12 = smov 16   ;;  %p293_p0 = scmp.lt.s32.totalorder %s3659_s28, 5 }
  0x34   : > { %3108 = dma.hbm_to_vmem [thread:$0]  (!%p3783_p5), %s3777_s11, 8192, %s3787_s13, %s3790_s15, %s3662_s16, %s4795_s10, %s4796_s12  }
  0x35   : > { %p4820_p2 = scmp.ge.s32.totalorder %s3659_s28, 1  ;;  %s3830_s8 = sadd.s32 4294967295, %s3659_s28  }
  0x36   : > { %s2861_s9 = sadd.s32 4294967294, %s3659_s28   ;;  %s36_s7 = sadd.s32 1, %s3651_s26 }
  0x37   : > { %p3825_p3 = pnand %p4820_p2, %p293_p0  ;;  %s39_s29 = sadd.s32 1, %s3655_s27 }
  0x38   : > { %p37_p6 = scmp.ge.s32.totalorder %s36_s7, 2  ;;  %s46_s11 = sadd.s32 1, %s3639_s23 }
  0x39   : > { %s4821_s30 = scalar_select %p3825_p3, 1, 0 }
  0x3a   : > { %p53_p10 = scmp.ne.s32.totalorder %s3639_s23, %s3635_s22  ;;  %p4798_p13 = scmp.ne.s32.totalorder %s3635_s22, %s3631_s21 }
  0x3b   : > { %s4867_s7 = smov (%p37_p6, %s36_s7), 0  ;;  %s4869_s29 = smov (!%p37_p6, %s39_s29), %s3655_s27 }
  0x3c   : > { %4822 = sst [smem:[#allocation20_spill]] %s4867_s7  ;;  %p4823_p1 = scmp.eq.s32.totalorder %s3659_s28, 0 }
  0x3d   : > { %p60_p7 = scmp.eq.s32.totalorder %s3830_s8, 0  ;;  %p41_p9 = scmp.ge.s32.totalorder %s4869_s29, 2 }
  0x3e   : > { %p3848_p4 = por %p4823_p1, %p53_p10  ;;  %s69_s16 = ssub.s32 %s3651_s26, %s4867_s7 }
  0x3f   : > { %p3858_p11 = por %p60_p7, %p4798_p13  ;;  %p70_p12 = scmp.eq.s32.totalorder %s69_s16, 0 }
  0x40   : > { %s4871_s29 = smov (%p41_p9, %s4869_s29), 0  ;;  %s4827_s12 = sadd.s32 1, %s3627_s20 }
  0x41   : > { %s4825_s10 = scalar_select %p3858_p11, 1, 0 }
  0x42   : > { %4826 = sst [smem:[#allocation21_spill]] %s4871_s29  ;;  %s43_s5 = ssub.s32 %s3655_s27, %s4871_s29 }
  0x43   : > { %s3867_s1 = scalar_select %p70_p12, %s3627_s20, %s4827_s12  }
  0x44   : > { %p4829_p0 = scmp.ne.s32.totalorder %s3623_s19, %s3619_s18  ;;  %p44_p6 = scmp.eq.s32.totalorder %s43_s5, 0 }
  0x45   : > { %4828 = sst [smem:[#allocation22_spill]] %s3867_s1  ;;  %p182_p1 = scmp.eq.s32.totalorder %s3830_s8, 3 }
  0x46   : > { %p3874_p2 = por %p4829_p0, %p60_p7  ;;  %p188_p13 = scmp.eq.s32.totalorder %s2861_s9, 3 }
  0x47   : > { %s211_s16 = sand.u32 1, %s3639_s23   ;;  %p3886_p9 = por %p182_p1, %p53_p10 }
  0x48   : > { %s4830_s25 = scalar_select %p3874_p2, 1, 0 }
  0x49   : > { %s3881_s7 = scalar_select %p44_p6, %s3639_s23, %s46_s11  }
  0x4a   : > { %s4832_s12 = scalar_select %p3886_p9, 1, 0 }
  0x4b   : > { %4831 = sst [smem:[#allocation23_spill]] %s3881_s7  ;;  %p4833_p12 = scmp.ne.s32.totalorder %s3635_s22, %s3631_s21 }
  0x4c   : > { %s2864_s29 = sshll.u32 %s211_s16, 9  ;;  %s3021_s1 = sshll.u32 %s3655_s27, 13 }
  0x4d   : > { %p3893_p11 = por %p188_p13, %p4833_p12  ;;  %s3901_s5 = scalar_lea.hbm %s4786_s0, %s3021_s1 }
  0x4e   : > { %s215_s9 = scalar_lea.vmem [#allocation3], %s2864_s29  ;;  %p4836_p10 = scmp.lt.s32.totalorder %s3659_s28, 4 }
  0x4f   : > { %s4834_s18 = scalar_select %p3893_p11, 1, 0 }
  0x50   : > { %s223_s11 = sshll.u32 %s215_s9, 4  ;;  %p3909_p13 = pnand %p4836_p10, %p3848_p4  ;;  %s3903_s11 = int_to_ptr.vmem [resolvable:$true] %s223_s11 }
  0x51   : > { %4835 = sst [smem:[#allocation24_spill]] %s4834_s18  ;;  %s2871_s27 = sshll.u32 %s3770_s6, 2 }
  0x52   : > { %s3023_s4 = sshll.u32 %s3651_s26, 6  ;;  %s3915_s1 = scalar_lea.sflag [#allocation4], %s211_s16 }
  0x53   : > { %s3439_s20 = scalar_lea.hbm %s3901_s5, 8192  ;;  %p3441_p0 = pneg %p3909_p13 }
  0x54   : > { %p3440_p7 = scmp.ne.s32.totalorder %s3901_s5, %s3439_s20  ;;  %s3444_s9 = scalar_lea.hbm %s4786_s0, 16384 }
  0x55   : > { %p3445_p4 = scmp.lt.u32.totalorder %s3901_s5, %s4786_s0  ;;  %p3446_p12 = scmp.lt.u32.totalorder %s3444_s9, %s3439_s20 }
  0x56   : > { %p3442_p6 = pnand %p3441_p0, %p3440_p7  ;;  %p3448_p11 = scmp.lt.u32.totalorder %s3439_s20, %s3901_s5 }
  0x57   : > { %p3447_p10 = por %p3446_p12, %p3445_p4 }
  0x58   : > { %p3443_p1 = pneg %p3442_p6 }
  0x59   : > { %p3449_p9 = por %p3448_p11, %p3447_p10 }
  0x5b   : > { %p3450_p2 = pnand %p3449_p9, %p3443_p1 }
  0x5d   : > { %3453 = shalt.err (!%p3450_p2)
}
  0x5e   : > { %s3454_s16 = scalar_lea.vmem %s3903_s11, 8192  ;;  %s3665_s29 = smov [#allocation3]  }
  0x5f   : > { %p3455_p7 = scmp.ne.s32.totalorder %s3903_s11, %s3454_s16  ;;  %s3459_s13 = sshll.u32 %s3665_s29, 4  ;;  %s3460_s13 = int_to_ptr.vmem [resolvable:$false] %s3459_s13 }
  0x60   : > { %s3461_s23 = scalar_lea.vmem %s3460_s13, 16384  ;;  %p3462_p5 = scmp.lt.s32.totalorder %s3903_s11, %s3460_s13 }
  0x61   : > { %p3457_p6 = pnand %p3455_p7, %p3441_p0  ;;  %p3463_p4 = scmp.lt.s32.totalorder %s3461_s23, %s3454_s16 }
  0x63   : > { %p3458_p3 = pneg %p3457_p6  ;;  %p3464_p12 = por %p3463_p4, %p3462_p5 }
  0x65   : > { %p3465_p11 = pnand %p3464_p12, %p3458_p3 }
  0x67   : > { %3468 = shalt.err (!%p3465_p11)
}
  0x68   : > { %s4838_s18 = smov 16   ;;  %s4839_s20 = smov 256  }
  0x69   : > { %3105 = dma.hbm_to_vmem [thread:$0]  (!%p3909_p13), %s3901_s5, 8192, %s3903_s11, %s3915_s1, %s4839_s20, %s4839_s20, %s4838_s18  }
  0x6a   : > { %s3951_s16 = scalar_lea.hbm %s4788_s2, %s3023_s4  ;;  %s258_s7 = scalar_lea.vmem [#allocation8], %s2871_s27 }
  0x6b   : > { %s266_s13 = sshll.u32 %s258_s7, 4  ;;  %s3469_s23 = scalar_lea.hbm %s3951_s16, 64  ;;  %s267_s13 = int_to_ptr.vmem [resolvable:$true] %s266_s13 }
  0x6c   : > { %p3470_p5 = scmp.ne.s32.totalorder %s3951_s16, %s3469_s23  ;;  %s3474_s1 = scalar_lea.hbm %s4788_s2, 128 }
  0x6d   : > { %p3475_p9 = scmp.lt.u32.totalorder %s3951_s16, %s4788_s2  ;;  %p3476_p13 = scmp.lt.u32.totalorder %s3474_s1, %s3469_s23 }
  0x6e   : > { %p3472_p3 = pnand %p3470_p5, %p3796_p8  ;;  %p3478_p1 = scmp.lt.u32.totalorder %s3469_s23, %s3951_s16 }
  0x6f   : > { %p3477_p0 = por %p3476_p13, %p3475_p9 }
  0x70   : > { %p3473_p2 = pneg %p3472_p3 }
  0x71   : > { %p3479_p10 = por %p3478_p1, %p3477_p0 }
  0x73   : > { %p3480_p7 = pnand %p3479_p10, %p3473_p2 }
  0x75   : > { %3483 = shalt.err (!%p3480_p7)
}
  0x76   : > { %s3484_s27 = scalar_lea.vmem %s267_s13, 64  ;;  %s3666_s20 = smov [#allocation8]  }
  0x77   : > { %p3485_p6 = scmp.ne.s32.totalorder %s267_s13, %s3484_s27  ;;  %s3489_s9 = sshll.u32 %s3666_s20, 4  ;;  %s3490_s9 = int_to_ptr.vmem [resolvable:$false] %s3489_s9 }
  0x78   : > { %s3491_s29 = scalar_lea.vmem %s3490_s9, 128  ;;  %p3492_p11 = scmp.lt.s32.totalorder %s267_s13, %s3490_s9 }
  0x79   : > { %p3487_p4 = pnand %p3485_p6, %p3796_p8  ;;  %p3493_p5 = scmp.lt.s32.totalorder %s3491_s29, %s3484_s27 }
  0x7b   : > { %p3488_p12 = pneg %p3487_p4  ;;  %p3494_p3 = por %p3493_p5, %p3492_p11 }
  0x7d   : > { %p3495_p9 = pnand %p3494_p3, %p3488_p12 }
  0x7f   : > { %3498 = shalt.err (!%p3495_p9)
}
  0x80   : > { %p4840_p13 = scmp.ne.s32.totalorder %s4818_s14, 0  ;;  %s3025_s7 = sshll.u32 %s3651_s26, 13 }
  0x81   : > { %s3977_s11 = scalar_lea.hbm %s4789_s3, %s3025_s7  ;;  %s4841_s1 = sshll.u32 %s3770_s6, 9 }
  0x82   : > { %3111 = dma.hbm_to_vmem [thread:$0]  (!%p4840_p13), %s3951_s16, 64, %s267_s13, %s3790_s15  }
  0x83   : > { %s277_s18 = scalar_lea.vmem [#allocation9], %s4841_s1  ;;  %s274_s27 = scalar_lea.sflag [#allocation10], %s3770_s6 }
  0x84   : > { %s285_s4 = sshll.u32 %s277_s18, 4  ;;  %s3499_s20 = scalar_lea.hbm %s3977_s11, 8192  ;;  %s3981_s4 = int_to_ptr.vmem [resolvable:$true] %s285_s4 }
  0x85   : > { %p3500_p2 = scmp.ne.s32.totalorder %s3977_s11, %s3499_s20  ;;  %s3504_s13 = scalar_lea.hbm %s4789_s3, 16384 }
  0x86   : > { %p3505_p10 = scmp.lt.u32.totalorder %s3977_s11, %s4789_s3  ;;  %p3506_p7 = scmp.lt.u32.totalorder %s3504_s13, %s3499_s20 }
  0x87   : > { %p3502_p0 = pnand %p3500_p2, %p3796_p8  ;;  %p3508_p4 = scmp.lt.u32.totalorder %s3499_s20, %s3977_s11 }
  0x88   : > { %p3507_p6 = por %p3506_p7, %p3505_p10 }
  0x89   : > { %p3503_p1 = pneg %p3502_p0 }
  0x8a   : > { %p3509_p12 = por %p3508_p4, %p3507_p6 }
  0x8c   : > { %p3510_p11 = pnand %p3509_p12, %p3503_p1 }
  0x8e   : > { %3513 = shalt.err (!%p3510_p11)
}
  0x8f   : > { %s3514_s7 = scalar_lea.vmem %s3981_s4, 8192  ;;  %s3667_s23 = smov [#allocation9]  }
  0x90   : > { %p3515_p5 = scmp.ne.s32.totalorder %s3981_s4, %s3514_s7  ;;  %s3519_s5 = sshll.u32 %s3667_s23, 4  ;;  %s3520_s5 = int_to_ptr.vmem [resolvable:$false] %s3519_s5 }
  0x91   : > { %s3521_s1 = scalar_lea.vmem %s3520_s5, 16384  ;;  %p3522_p2 = scmp.lt.s32.totalorder %s3981_s4, %s3520_s5 }
  0x92   : > { %p3517_p3 = pnand %p3515_p5, %p3796_p8  ;;  %p3523_p0 = scmp.lt.s32.totalorder %s3521_s1, %s3514_s7 }
  0x94   : > { %p3518_p9 = pneg %p3517_p3  ;;  %p3524_p10 = por %p3523_p0, %p3522_p2 }
  0x96   : > { %p3525_p7 = pnand %p3524_p10, %p3518_p9 }
  0x98   : > { %3528 = shalt.err (!%p3525_p7)
}
  0x99   : > { %s3668_s18 = smov 128   ;;  %s3669_s20 = smov 8  }
  0x9a   : > { %3114 = dma.hbm_to_vmem [thread:$0]  (!%p4840_p13), %s3977_s11, 8192, %s3981_s4, %s274_s27, %s3668_s18, %s3668_s18, %s3669_s20  }
  0x9b   : > { %p4842_p8 = scmp.ne.s32.totalorder %s4821_s30, 0 }
  0x9c   : > { %s4010_s17 = sand.u32 (!%p4842_p8), 1, %s3635_s22   ;;  %p4843_p1 = scmp.ne.s32.totalorder (!%p4842_p8), %s4825_s10, 0 }
  0x9d   : > { %297 = sbr.rel (%p4842_p8) target bundleno = 998 (0x3e6), region = 40  ;;  %s2879_s15 = sshll.u32 (!%p4842_p8), %s4010_s17, 9 }
  0x9e   : > { %s300_s16 = scalar_lea.sflag (!%p4842_p8), [#allocation4], %s4010_s17  ;;  %s4014_s13 = scalar_lea.vmem (!%p4842_p8), [#allocation3], %s2879_s15 }
  0xa4   : > { %3602 = dma.done.wait (%p4843_p1), %s300_s16, 8192  }
  0xa5   : > { %3604 = vsyncadd (%p4843_p1), %s300_s16, 4294959104  ;;  %s308_s6 = sand.u32 1, %s3830_s8   ;;  %s310_s14 = sand.u32 1, %s3623_s19  }
  0xa6   : > { %s2880_s30 = sshll.u32 %s310_s14, 9  ;;  %s309_s11 = scalar_lea.sflag [#allocation7], %s308_s6 }
  0xa7   : > { %s4022_s4 = scalar_lea.vmem [#allocation6], %s2880_s30  ;;  %p4844_p13 = scmp.ne.s32.totalorder %s4830_s25, 0 }
  0xa9   : > { %3606 = dma.done.wait (%p4844_p13), %s309_s11, 8256  }
  0xaa   : > { %3608 = vsyncadd (%p4844_p13), %s309_s11, 4294959040  ;;  %s2881_s27 = sshll.u32 %s310_s14, 2  ;;  %s327_s10 = scalar_lea.sflag [#allocation10], %s310_s14 }
  0xab   : > { %s4028_s9 = scalar_lea.vmem [#allocation8], %s2881_s27  ;;  %s4030_s29 = scalar_lea.vmem [#allocation9], %s2880_s30 }
  0xac   : > { %3610 = dma.done.wait (%p4844_p13), %s327_s10, 8192  }
  0xad   : > { %3612 = vsyncadd (%p4844_p13), %s327_s10, 4294959104  ;;  %s4036_s8 = scalar_lea.vmem [#allocation11], %s2879_s15  ;;  %p2884_p6 = scmp.ne.s32.totalorder %s3643_s24, 0 }
  0xae   : > { %v3670_v0 = vmov (!%p2884_p6), 0.0  }
  0xaf   : > { %380 = sbr.rel (%p2884_p6) target bundleno = 207 (0xcf), region = 60  ;;  %381 = vst [vmem:[#allocation2] sm:$0xff] (!%p2884_p6), %v3670_v0  ;;  %382 = vst [vmem:[#allocation2 + $0x8] sm:$0xff] (!%p2884_p6), %v3670_v0 }
  0xb0   : > { %383 = vst [vmem:[#allocation2 + $0x10] sm:$0xff] (!%p2884_p6), %v3670_v0  ;;  %384 = vst [vmem:[#allocation2 + $0x18] sm:$0xff] (!%p2884_p6), %v3670_v0 }
  0xb1   : > { %385 = vst [vmem:[#allocation2 + $0x20] sm:$0xff] (!%p2884_p6), %v3670_v0  ;;  %386 = vst [vmem:[#allocation2 + $0x28] sm:$0xff] (!%p2884_p6), %v3670_v0 }
  0xb2   : > { %387 = vst [vmem:[#allocation2 + $0x30] sm:$0xff] (!%p2884_p6), %v3670_v0  ;;  %388 = vst [vmem:[#allocation2 + $0x38] sm:$0xff] (!%p2884_p6), %v3670_v0 }
  0xb3   : > { %389 = vst [vmem:[#allocation2 + $0x40] sm:$0xff] (!%p2884_p6), %v3670_v0  ;;  %390 = vst [vmem:[#allocation2 + $0x48] sm:$0xff] (!%p2884_p6), %v3670_v0 }
  0xb4   : > { %391 = vst [vmem:[#allocation2 + $0x50] sm:$0xff] (!%p2884_p6), %v3670_v0  ;;  %392 = vst [vmem:[#allocation2 + $0x58] sm:$0xff] (!%p2884_p6), %v3670_v0 }
  0xb5   : > { %393 = vst [vmem:[#allocation2 + $0x60] sm:$0xff] (!%p2884_p6), %v3670_v0  ;;  %394 = vst [vmem:[#allocation2 + $0x68] sm:$0xff] (!%p2884_p6), %v3670_v0 }
  0xb6   : > { %395 = vst [vmem:[#allocation2 + $0x70] sm:$0xff] %v3670_v0  ;;  %396 = vst [vmem:[#allocation2 + $0x78] sm:$0xff] %v3670_v0 }
  0xb7   : > { %397 = vst [vmem:[#allocation2 + $0x80] sm:$0xff] %v3670_v0  ;;  %398 = vst [vmem:[#allocation2 + $0x88] sm:$0xff] %v3670_v0 }
  0xb8   : > { %399 = vst [vmem:[#allocation2 + $0x90] sm:$0xff] %v3670_v0  ;;  %400 = vst [vmem:[#allocation2 + $0x98] sm:$0xff] %v3670_v0 }
  0xb9   : > { %401 = vst [vmem:[#allocation2 + $0xa0] sm:$0xff] %v3670_v0  ;;  %402 = vst [vmem:[#allocation2 + $0xa8] sm:$0xff] %v3670_v0 }
  0xba   : > { %403 = vst [vmem:[#allocation2 + $0xb0] sm:$0xff] %v3670_v0  ;;  %404 = vst [vmem:[#allocation2 + $0xb8] sm:$0xff] %v3670_v0 }
  0xbb   : > { %405 = vst [vmem:[#allocation2 + $0xc0] sm:$0xff] %v3670_v0  ;;  %406 = vst [vmem:[#allocation2 + $0xc8] sm:$0xff] %v3670_v0 }
  0xbc   : > { %407 = vst [vmem:[#allocation2 + $0xd0] sm:$0xff] %v3670_v0  ;;  %408 = vst [vmem:[#allocation2 + $0xd8] sm:$0xff] %v3670_v0 }
  0xbd   : > { %409 = vst [vmem:[#allocation2 + $0xe0] sm:$0xff] %v3670_v0  ;;  %410 = vst [vmem:[#allocation2 + $0xe8] sm:$0xff] %v3670_v0 }
  0xbe   : > { %411 = vst [vmem:[#allocation2 + $0xf0] sm:$0xff] %v3670_v0  ;;  %412 = vst [vmem:[#allocation2 + $0xf8] sm:$0xff] %v3670_v0 }
  0xbf   : > { %413 = vst [vmem:[#allocation2 + $0x100] sm:$0xff] %v3670_v0  ;;  %414 = vst [vmem:[#allocation2 + $0x108] sm:$0xff] %v3670_v0 }
  0xc0   : > { %415 = vst [vmem:[#allocation2 + $0x110] sm:$0xff] %v3670_v0  ;;  %416 = vst [vmem:[#allocation2 + $0x118] sm:$0xff] %v3670_v0 }
  0xc1   : > { %417 = vst [vmem:[#allocation2 + $0x120] sm:$0xff] %v3670_v0  ;;  %418 = vst [vmem:[#allocation2 + $0x128] sm:$0xff] %v3670_v0 }
  0xc2   : > { %419 = vst [vmem:[#allocation2 + $0x130] sm:$0xff] %v3670_v0  ;;  %420 = vst [vmem:[#allocation2 + $0x138] sm:$0xff] %v3670_v0 }
  0xc3   : > { %421 = vst [vmem:[#allocation2 + $0x140] sm:$0xff] %v3670_v0  ;;  %422 = vst [vmem:[#allocation2 + $0x148] sm:$0xff] %v3670_v0 }
  0xc4   : > { %423 = vst [vmem:[#allocation2 + $0x150] sm:$0xff] %v3670_v0  ;;  %424 = vst [vmem:[#allocation2 + $0x158] sm:$0xff] %v3670_v0 }
  0xc5   : > { %425 = vst [vmem:[#allocation2 + $0x160] sm:$0xff] %v3670_v0  ;;  %426 = vst [vmem:[#allocation2 + $0x168] sm:$0xff] %v3670_v0 }
  0xc6   : > { %427 = vst [vmem:[#allocation2 + $0x170] sm:$0xff] %v3670_v0  ;;  %428 = vst [vmem:[#allocation2 + $0x178] sm:$0xff] %v3670_v0 }
  0xc7   : > { %429 = vst [vmem:[#allocation2 + $0x180] sm:$0xff] %v3670_v0  ;;  %430 = vst [vmem:[#allocation2 + $0x188] sm:$0xff] %v3670_v0 }
  0xc8   : > { %431 = vst [vmem:[#allocation2 + $0x190] sm:$0xff] %v3670_v0  ;;  %432 = vst [vmem:[#allocation2 + $0x198] sm:$0xff] %v3670_v0 }
  0xc9   : > { %433 = vst [vmem:[#allocation2 + $0x1a0] sm:$0xff] %v3670_v0  ;;  %434 = vst [vmem:[#allocation2 + $0x1a8] sm:$0xff] %v3670_v0 }
  0xca   : > { %435 = vst [vmem:[#allocation2 + $0x1b0] sm:$0xff] %v3670_v0  ;;  %436 = vst [vmem:[#allocation2 + $0x1b8] sm:$0xff] %v3670_v0 }
  0xcb   : > { %437 = vst [vmem:[#allocation2 + $0x1c0] sm:$0xff] %v3670_v0  ;;  %438 = vst [vmem:[#allocation2 + $0x1c8] sm:$0xff] %v3670_v0 }
  0xcc   : > { %439 = vst [vmem:[#allocation2 + $0x1d0] sm:$0xff] %v3670_v0  ;;  %440 = vst [vmem:[#allocation2 + $0x1d8] sm:$0xff] %v3670_v0 }
  0xcd   : > { %441 = vst [vmem:[#allocation2 + $0x1e0] sm:$0xff] %v3670_v0  ;;  %442 = vst [vmem:[#allocation2 + $0x1e8] sm:$0xff] %v3670_v0 }
  0xce   : > { %443 = vst [vmem:[#allocation2 + $0x1f0] sm:$0xff] %v3670_v0  ;;  %444 = vst [vmem:[#allocation2 + $0x1f8] sm:$0xff] %v3670_v0 }
  0xcf PF: > { %v3217_v1 = vld [vmem:[%s4022_s4 + $0x4] ss:$16 sps:$4 sm:$0xff]   ;;  %v3219_v2 = vld [vmem:[%s4022_s4] ss:$16 sps:$4 sm:$0xff]   ;;  %v446_v14 = vld [vmem:[%s4014_s13 + $0x8] sm:$0xff]  ;;  %p3013_p4 = scmp.ne.s32.totalorder %s3643_s24, 1 }
  0xd0   : > { %947 = vmatprep.subr.bf16.mxu1 %v3217_v1  ;;  %v3220_v3 = vld [vmem:[%s4022_s4 + $0x24] ss:$16 sps:$4 sm:$0xff]   ;;  %v3222_v4 = vld [vmem:[%s4022_s4 + $0x20] ss:$16 sps:$4 sm:$0xff]   ;;  %v448_v15 = vld [vmem:[%s4014_s13 + $0x18] sm:$0xff]  ;;  %s4845_s23 = sld [smem:[#allocation26_spill]] (!%p3013_p4) }
  0xd1   : > { %948 = vmatpush1.bf16.msra.mxu1 %v3219_v2  ;;  %v3223_v5 = vld [vmem:[%s4022_s4 + $0x44] ss:$16 sps:$4 sm:$0xff]   ;;  %v3225_v6 = vld [vmem:[%s4022_s4 + $0x40] ss:$16 sps:$4 sm:$0xff]   ;;  %v4118_v16 = vpack.c.bf16 %v448_v15, %v446_v14  ;;  %v3267_v38 = vld [vmem:[%s4022_s4 + $0xc] ss:$16 sps:$4 sm:$0xff]  }
  0xd2   : > { %949 = vmatprep.subr.bf16.mxu1 %v3220_v3  ;;  %v3226_v7 = vld [vmem:[%s4022_s4 + $0x64] ss:$16 sps:$4 sm:$0xff]   ;;  %v3228_v8 = vld [vmem:[%s4022_s4 + $0x60] ss:$16 sps:$4 sm:$0xff]   ;;  %v450_v39 = vld [vmem:[%s4014_s13 + $0x28] sm:$0xff] }
  0xd3   : > { %v3229_v9 = vld [vmem:[%s4022_s4 + $0x84] ss:$16 sps:$4 sm:$0xff]   ;;  %v3231_v10 = vld [vmem:[%s4022_s4 + $0x80] ss:$16 sps:$4 sm:$0xff]   ;;  %979 = vmatprep.mubr.bf16.mxu1 %v4118_v16  ;;  %v452_v40 = vld [vmem:[%s4014_s13 + $0x38] sm:$0xff] }
  0xd4   : > { %v3232_v11 = vld [vmem:[%s4022_s4 + $0xa4] ss:$16 sps:$4 sm:$0xff]   ;;  %v3234_v12 = vld [vmem:[%s4022_s4 + $0xa0] ss:$16 sps:$4 sm:$0xff]   ;;  %v3265_v42 = vld [vmem:[%s4022_s4 + $0x8] ss:$16 sps:$4 sm:$0xff]   ;;  %v4148_v43 = vpack.c.bf16 %v452_v40, %v450_v39 }
  0xd5   : > { %950 = vmatpush1.bf16.msra.mxu1 %v3222_v4  ;;  %v3235_v13 = vld [vmem:[%s4022_s4 + $0xc4] ss:$16 sps:$4 sm:$0xff]   ;;  %v3237_v17 = vld [vmem:[%s4022_s4 + $0xc0] ss:$16 sps:$4 sm:$0xff]   ;;  %v3270_v44 = vld [vmem:[%s4022_s4 + $0x2c] ss:$16 sps:$4 sm:$0xff]  }
  0xd6   : > { %951 = vmatprep.subr.bf16.mxu1 %v3223_v5  ;;  %v3238_v18 = vld [vmem:[%s4022_s4 + $0xe4] ss:$16 sps:$4 sm:$0xff]   ;;  %v3240_v19 = vld [vmem:[%s4022_s4 + $0xe0] ss:$16 sps:$4 sm:$0xff]   ;;  %v3268_v47 = vld [vmem:[%s4022_s4 + $0x28] ss:$16 sps:$4 sm:$0xff]  }
  0xd7   : > { %v3241_v20 = vld [vmem:[%s4022_s4 + $0x104] ss:$16 sps:$4 sm:$0xff]   ;;  %v3243_v21 = vld [vmem:[%s4022_s4 + $0x100] ss:$16 sps:$4 sm:$0xff]   ;;  %v454_v48 = vld [vmem:[%s4014_s13 + $0x48] sm:$0xff] }
  0xd8   : > { %v3244_v22 = vld [vmem:[%s4022_s4 + $0x124] ss:$16 sps:$4 sm:$0xff]   ;;  %v3246_v23 = vld [vmem:[%s4022_s4 + $0x120] ss:$16 sps:$4 sm:$0xff]   ;;  %v456_v49 = vld [vmem:[%s4014_s13 + $0x58] sm:$0xff] }
  0xd9   : > { %952 = vmatpush1.bf16.msra.mxu1 %v3225_v6  ;;  %v3247_v24 = vld [vmem:[%s4022_s4 + $0x144] ss:$16 sps:$4 sm:$0xff]   ;;  %v3249_v25 = vld [vmem:[%s4022_s4 + $0x140] ss:$16 sps:$4 sm:$0xff]   ;;  %v3273_v50 = vld [vmem:[%s4022_s4 + $0x4c] ss:$16 sps:$4 sm:$0xff]   ;;  %v4163_v54 = vpack.c.bf16 %v456_v49, %v454_v48 }
  0xda   : > { %953 = vmatprep.subr.bf16.mxu1 %v3226_v7  ;;  %v3250_v26 = vld [vmem:[%s4022_s4 + $0x164] ss:$16 sps:$4 sm:$0xff]   ;;  %v3252_v27 = vld [vmem:[%s4022_s4 + $0x160] ss:$16 sps:$4 sm:$0xff]   ;;  %v3271_v51 = vld [vmem:[%s4022_s4 + $0x48] ss:$16 sps:$4 sm:$0xff]  }
  0xdb   : > { %v3253_v28 = vld [vmem:[%s4022_s4 + $0x184] ss:$16 sps:$4 sm:$0xff]   ;;  %v3255_v29 = vld [vmem:[%s4022_s4 + $0x180] ss:$16 sps:$4 sm:$0xff]   ;;  %v3276_v53 = vld [vmem:[%s4022_s4 + $0x6c] ss:$16 sps:$4 sm:$0xff]  }
  0xdc   : > { %v3256_v30 = vld [vmem:[%s4022_s4 + $0x1a4] ss:$16 sps:$4 sm:$0xff]   ;;  %v3258_v31 = vld [vmem:[%s4022_s4 + $0x1a0] ss:$16 sps:$4 sm:$0xff]   ;;  %v3274_v57 = vld [vmem:[%s4022_s4 + $0x68] ss:$16 sps:$4 sm:$0xff]  }
  0xdd   : > { %954 = vmatpush1.bf16.msra.mxu1 %v3228_v8  ;;  %v3259_v32 = vld [vmem:[%s4022_s4 + $0x1c4] ss:$16 sps:$4 sm:$0xff]   ;;  %v3261_v33 = vld [vmem:[%s4022_s4 + $0x1c0] ss:$16 sps:$4 sm:$0xff]   ;;  %v458_v58 = vld [vmem:[%s4014_s13 + $0x68] sm:$0xff] }
  0xde   : > { %955 = vmatprep.subr.bf16.mxu1 %v3229_v9  ;;  %v3262_v34 = vld [vmem:[%s4022_s4 + $0x1e4] ss:$16 sps:$4 sm:$0xff]   ;;  %v3264_v35 = vld [vmem:[%s4022_s4 + $0x1e0] ss:$16 sps:$4 sm:$0xff]   ;;  %v460_v59 = vld [vmem:[%s4014_s13 + $0x78] sm:$0xff] }
  0xdf   : > { %v445_v36 = vld [vmem:[%s4014_s13] sm:$0xff]  ;;  %v447_v37 = vld [vmem:[%s4014_s13 + $0x10] sm:$0xff]  ;;  %v3279_v60 = vld [vmem:[%s4022_s4 + $0x8c] ss:$16 sps:$4 sm:$0xff]   ;;  %v4177_v0 = vpack.c.bf16 %v460_v59, %v458_v58 }
  0xe0   : > { %v4145_v41 = vpack.c.bf16 %v447_v37, %v445_v36  ;;  %v449_v45 = vld [vmem:[%s4014_s13 + $0x20] sm:$0xff]  ;;  %v451_v46 = vld [vmem:[%s4014_s13 + $0x30] sm:$0xff]  ;;  %v3277_v61 = vld [vmem:[%s4022_s4 + $0x88] ss:$16 sps:$4 sm:$0xff]  }
  0xe1   : > { %956 = vmatpush1.bf16.msra.mxu1 %v3231_v10  ;;  %v4160_v52 = vpack.c.bf16 %v451_v46, %v449_v45  ;;  %v453_v55 = vld [vmem:[%s4014_s13 + $0x40] sm:$0xff]  ;;  %v455_v56 = vld [vmem:[%s4014_s13 + $0x50] sm:$0xff]  ;;  %v3282_v63 = vld [vmem:[%s4022_s4 + $0xac] ss:$16 sps:$4 sm:$0xff]  }
  0xe2   : > { %957 = vmatprep.subr.bf16.mxu1 %v3232_v11  ;;  %v4174_v62 = vpack.c.bf16 %v455_v56, %v453_v55  ;;  %v457_v1 = vld [vmem:[%s4014_s13 + $0x60] sm:$0xff]  ;;  %v459_v2 = vld [vmem:[%s4014_s13 + $0x70] sm:$0xff]  ;;  %v3280_v3 = vld [vmem:[%s4022_s4 + $0xa8] ss:$16 sps:$4 sm:$0xff]  }
  0xe3   : > { %v462_v4 = vld [vmem:[%s4014_s13 + $0x88] sm:$0xff]  ;;  %v464_v5 = vld [vmem:[%s4014_s13 + $0x98] sm:$0xff]  ;;  %v4187_v7 = vpack.c.bf16 %v459_v2, %v457_v1  ;;  %v461_v11 = vld [vmem:[%s4014_s13 + $0x80] sm:$0xff] }
  0xe4   : > { %v3285_v6 = vld [vmem:[%s4022_s4 + $0xcc] ss:$16 sps:$4 sm:$0xff]   ;;  %v4189_v8 = vpack.c.bf16 %v464_v5, %v462_v4  ;;  %v3283_v9 = vld [vmem:[%s4022_s4 + $0xc8] ss:$16 sps:$4 sm:$0xff]   ;;  %v473_v59 = vld [vmem:[%s4014_s13 + $0xe0] sm:$0xff] }
  0xe5   : > { %958 = vmatpush1.bf16.msra.mxu1 %v3234_v12  ;;  %v3288_v10 = vld [vmem:[%s4022_s4 + $0xec] ss:$16 sps:$4 sm:$0xff]   ;;  %v3286_v14 = vld [vmem:[%s4022_s4 + $0xe8] ss:$16 sps:$4 sm:$0xff]  }
  0xe6   : > { %959 = vmatprep.subr.bf16.mxu1 %v3235_v13  ;;  %v3313_v12 = vld [vmem:[%s4030_s29 + $0x4] ss:$8 sps:$4 sm:$0xff]   ;;  %v3315_v15 = vld [vmem:[%s4030_s29] ss:$8 sps:$4 sm:$0xff]   ;;  %v3324_v39 = vld [vmem:[%s4030_s29 + $0x30] ss:$8 sps:$4 sm:$0xff]  }
  0xe7   : > { %v463_v13 = vld [vmem:[%s4014_s13 + $0x90] sm:$0xff]  ;;  %1973 = vmatprep.subr.bf16.mxu0 %v3313_v12  ;;  %v3295_v36 = vld [vmem:[%s4022_s4 + $0x148] ss:$16 sps:$4 sm:$0xff]   ;;  %v3300_v37 = vld [vmem:[%s4022_s4 + $0x16c] ss:$16 sps:$4 sm:$0xff]  }
  0xe8   : > { %1974 = vmatpush1.bf16.msra.mxu0 %v3315_v15  ;;  %v3325_v40 = vld [vmem:[%s4030_s29 + $0x44] ss:$8 sps:$4 sm:$0xff]   ;;  %v3298_v45 = vld [vmem:[%s4022_s4 + $0x168] ss:$16 sps:$4 sm:$0xff]   ;;  %v3328_v56 = vld [vmem:[%s4030_s29 + $0x54] ss:$8 sps:$4 sm:$0xff]  }
  0xe9   : > { %960 = vmatpush1.bf16.msra.mxu1 %v3237_v17  ;;  %v466_v17 = vld [vmem:[%s4014_s13 + $0xa8] sm:$0xff]  ;;  %v480_v1 = vld [vmem:[%s4014_s13 + $0x118] sm:$0xff] }
  0xea   : > { %961 = vmatprep.subr.bf16.mxu1 %v3238_v18  ;;  %v468_v18 = vld [vmem:[%s4014_s13 + $0xb8] sm:$0xff]  ;;  %v474_v46 = vld [vmem:[%s4014_s13 + $0xe8] sm:$0xff] }
  0xeb   : > { %v3303_v48 = vld [vmem:[%s4022_s4 + $0x18c] ss:$16 sps:$4 sm:$0xff]   ;;  %v3327_v49 = vld [vmem:[%s4030_s29 + $0x40] ss:$8 sps:$4 sm:$0xff]  }
  0xec   : > { %v3306_v55 = vld [vmem:[%s4022_s4 + $0x1ac] ss:$16 sps:$4 sm:$0xff]   ;;  %v3310_v15 = vld [vmem:[%s4022_s4 + $0x1e8] ss:$16 sps:$4 sm:$0xff]  }
  0xed   : > { %962 = vmatpush1.bf16.msra.mxu1 %v3240_v19  ;;  %v3291_v19 = vld [vmem:[%s4022_s4 + $0x10c] ss:$16 sps:$4 sm:$0xff]  }
  0xee   : > { %963 = vmatprep.subr.bf16.mxu1 %v3241_v20  ;;  %v4203_v20 = vpack.c.bf16 %v463_v13, %v461_v11  ;;  %v3331_v58 = vld [vmem:[%s4030_s29 + $0x64] ss:$8 sps:$4 sm:$0xff]   ;;  %v3336_v11 = vld [vmem:[%s4030_s29 + $0x70] ss:$8 sps:$4 sm:$0xff]  }
  0xef   : > { %v3309_v2 = vld [vmem:[%s4022_s4 + $0x1cc] ss:$16 sps:$4 sm:$0xff]   ;;  %v477_v13 = vld [vmem:[%s4014_s13 + $0x100] sm:$0xff] }
  0xf0   : > { %v3337_v12 = vld [vmem:[%s4030_s29 + $0x84] ss:$8 sps:$4 sm:$0xff]  }
  0xf1   : > { %964 = vmatpush1.bf16.msra.mxu1 %v3243_v21  ;;  %v4205_v21 = vpack.c.bf16 %v468_v18, %v466_v17  ;;  %v482_v17 = vld [vmem:[%s4014_s13 + $0x128] sm:$0xff]  ;;  %v484_v18 = vld [vmem:[%s4014_s13 + $0x138] sm:$0xff] }
  0xf2   : > { %965 = vmatprep.subr.bf16.mxu1 %v3244_v22  ;;  %v3289_v22 = vld [vmem:[%s4022_s4 + $0x108] ss:$16 sps:$4 sm:$0xff]  }
  0xf5   : > { %966 = vmatpush1.bf16.msra.mxu1 %v3246_v23  ;;  %v3294_v23 = vld [vmem:[%s4022_s4 + $0x12c] ss:$16 sps:$4 sm:$0xff]  }
  0xf6   : > { %967 = vmatprep.subr.bf16.mxu1 %v3247_v24  ;;  %v3316_v24 = vld [vmem:[%s4030_s29 + $0x14] ss:$8 sps:$4 sm:$0xff]  }
  0xf7   : > { %1975 = vmatprep.subr.bf16.mxu0 %v3316_v24  ;;  %v3340_v24 = vld [vmem:[%s4030_s29 + $0x94] ss:$8 sps:$4 sm:$0xff]  }
  0xf9   : > { %968 = vmatpush1.bf16.msra.mxu1 %v3249_v25  ;;  %v3318_v25 = vld [vmem:[%s4030_s29 + $0x10] ss:$8 sps:$4 sm:$0xff]  }
  0xfa   : > { %969 = vmatprep.subr.bf16.mxu1 %v3250_v26  ;;  %v3319_v26 = vld [vmem:[%s4030_s29 + $0x24] ss:$8 sps:$4 sm:$0xff]   ;;  %1976 = vmatpush1.bf16.msra.mxu0 %v3318_v25  ;;  %v3342_v25 = vld [vmem:[%s4030_s29 + $0x90] ss:$8 sps:$4 sm:$0xff]  }
  0xfb   : > { %1977 = vmatprep.subr.bf16.mxu0 %v3319_v26  ;;  %v3343_v26 = vld [vmem:[%s4030_s29 + $0xa4] ss:$8 sps:$4 sm:$0xff]  }
  0xfd   : > { %970 = vmatpush1.bf16.msra.mxu1 %v3252_v27  ;;  %v465_v27 = vld [vmem:[%s4014_s13 + $0xa0] sm:$0xff] }
  0xfe   : > { %971 = vmatprep.subr.bf16.mxu1 %v3253_v28  ;;  %v467_v28 = vld [vmem:[%s4014_s13 + $0xb0] sm:$0xff] }
 0x101   : > { %972 = vmatpush1.bf16.msra.mxu1 %v3255_v29  ;;  %v3292_v29 = vld [vmem:[%s4022_s4 + $0x128] ss:$16 sps:$4 sm:$0xff]  }
 0x102   : > { %973 = vmatprep.subr.bf16.mxu1 %v3256_v30  ;;  %v470_v30 = vld [vmem:[%s4014_s13 + $0xc8] sm:$0xff] }
 0x105   : > { %974 = vmatpush1.bf16.msra.mxu1 %v3258_v31  ;;  %v472_v31 = vld [vmem:[%s4014_s13 + $0xd8] sm:$0xff] }
 0x106   : > { %975 = vmatprep.subr.bf16.mxu1 %v3259_v32  ;;  %v3297_v32 = vld [vmem:[%s4022_s4 + $0x14c] ss:$16 sps:$4 sm:$0xff]  }
 0x109   : > { %976 = vmatpush1.bf16.msra.mxu1 %v3261_v33  ;;  %v3321_v33 = vld [vmem:[%s4030_s29 + $0x20] ss:$8 sps:$4 sm:$0xff]  }
 0x10a   : > { %977 = vmatprep.subr.bf16.mxu1 %v3262_v34  ;;  %v4221_v34 = vpack.c.bf16 %v467_v28, %v465_v27  ;;  %1978 = vmatpush1.bf16.msra.mxu0 %v3321_v33  ;;  %v481_v27 = vld [vmem:[%s4014_s13 + $0x120] sm:$0xff]  ;;  %v483_v28 = vld [vmem:[%s4014_s13 + $0x130] sm:$0xff] }
 0x10d   : > { %978 = vmatpush1.bf16.msra.mxu1 %v3264_v35  ;;  %v4223_v35 = vpack.c.bf16 %v472_v31, %v470_v30  ;;  %v488_v30 = vld [vmem:[%s4014_s13 + $0x158] sm:$0xff]  ;;  %v3345_v31 = vld [vmem:[%s4030_s29 + $0xa0] ss:$8 sps:$4 sm:$0xff]  }
 0x10e   : > { %1140 = vmatprep.subr.bf16.mxu1 %v3267_v38  ;;  %v3322_v38 = vld [vmem:[%s4030_s29 + $0x34] ss:$8 sps:$4 sm:$0xff]  }
 0x10f   : > { %1979 = vmatprep.subr.bf16.mxu0 %v3322_v38  ;;  %v3349_v38 = vld [vmem:[%s4030_s29 + $0xc4] ss:$8 sps:$4 sm:$0xff]  }
 0x110   : > { %980 = vmatmul.mubr.bf16.vlgmr.msra.gmra.mrb[0].mxu1 %v4145_v41  ;;  %1980 = vmatpush1.bf16.msra.mxu0 %v3324_v39  ;;  %v485_v39 = vld [vmem:[%s4014_s13 + $0x140] sm:$0xff] }
 0x111   : > { %1141 = vmatpush1.bf16.msra.mxu1 %v3265_v42  ;;  %989 = vmatprep.mubr.bf16.mxu1 %v4148_v43  ;;  %v469_v42 = vld [vmem:[%s4014_s13 + $0xc0] sm:$0xff] }
 0x112   : > { %1142 = vmatprep.subr.bf16.mxu1 %v3270_v44  ;;  %v471_v44 = vld [vmem:[%s4014_s13 + $0xd0] sm:$0xff]  ;;  %1981 = vmatprep.subr.bf16.mxu0 %v3325_v40 }
 0x113   : > { %v487_v40 = vld [vmem:[%s4014_s13 + $0x150] sm:$0xff] }
 0x114   : > { %1982 = vmatpush1.bf16.msra.mxu0 %v3327_v49  ;;  %v489_v49 = vld [vmem:[%s4014_s13 + $0x160] sm:$0xff] }
 0x115   : > { %1143 = vmatpush1.bf16.msra.mxu1 %v3268_v47  ;;  %v476_v47 = vld [vmem:[%s4014_s13 + $0xf8] sm:$0xff]  ;;  %1983 = vmatprep.subr.bf16.mxu0 %v3328_v56  ;;  %v494_v56 = vld [vmem:[%s4014_s13 + $0x188] sm:$0xff] }
 0x116   : > { %1144 = vmatprep.subr.bf16.mxu1 %v3273_v50  ;;  %v4239_v50 = vpack.c.bf16 %v471_v44, %v469_v42  ;;  %v490_v42 = vld [vmem:[%s4014_s13 + $0x168] sm:$0xff]  ;;  %v492_v44 = vld [vmem:[%s4014_s13 + $0x178] sm:$0xff] }
 0x118   : > { %990 = vmatmul.mubr.bf16.gmra.mrb[4].mxu1 %v4160_v52 }
 0x119   : > { %999 = vmatprep.mubr.bf16.mxu1 %v4163_v54  ;;  %1145 = vmatpush1.bf16.msra.mxu1 %v3271_v51  ;;  %v4241_v51 = vpack.c.bf16 %v476_v47, %v474_v46  ;;  %v4302_v46 = vpack.c.bf16 %v487_v40, %v485_v39  ;;  %v4304_v47 = vpack.c.bf16 %v492_v44, %v490_v42  ;;  %v3366_v42 = vld [vmem:[%s4030_s29 + $0x114] ss:$8 sps:$4 sm:$0xff]  }
 0x11a   : > { %1146 = vmatprep.subr.bf16.mxu1 %v3276_v53  ;;  %v3301_v53 = vld [vmem:[%s4022_s4 + $0x188] ss:$16 sps:$4 sm:$0xff]  }
 0x11d   : > { %1147 = vmatpush1.bf16.msra.mxu1 %v3274_v57  ;;  %v3330_v57 = vld [vmem:[%s4030_s29 + $0x50] ss:$8 sps:$4 sm:$0xff]  }
 0x11e   : > { %1148 = vmatprep.subr.bf16.mxu1 %v3279_v60  ;;  %v475_v60 = vld [vmem:[%s4014_s13 + $0xf0] sm:$0xff]  ;;  %1984 = vmatpush1.bf16.msra.mxu0 %v3330_v57  ;;  %v496_v57 = vld [vmem:[%s4014_s13 + $0x198] sm:$0xff] }
 0x11f   : > { %v4257_v4 = vpack.c.bf16 %v475_v60, %v473_v59  ;;  %1985 = vmatprep.subr.bf16.mxu0 %v3331_v58  ;;  %v3355_v59 = vld [vmem:[%s4030_s29 + $0xe4] ss:$8 sps:$4 sm:$0xff]   ;;  %v4317_v60 = vpack.c.bf16 %v496_v57, %v494_v56 }
 0x120   : > { %1000 = vmatmul.mubr.bf16.gmra.mrb[8].mxu1 %v4174_v62  ;;  %v3369_v56 = vld [vmem:[%s4030_s29 + $0x124] ss:$8 sps:$4 sm:$0xff]  }
 0x121   : > { %1009 = vmatprep.mubr.bf16.mxu1 %v4177_v0  ;;  %1149 = vmatpush1.bf16.msra.mxu1 %v3277_v61  ;;  %v3304_v61 = vld [vmem:[%s4022_s4 + $0x1a8] ss:$16 sps:$4 sm:$0xff]  }
 0x122   : > { %1150 = vmatprep.subr.bf16.mxu1 %v3282_v63  ;;  %v478_v63 = vld [vmem:[%s4014_s13 + $0x108] sm:$0xff] }
 0x123   : > { %v4259_v5 = vpack.c.bf16 %v480_v1, %v478_v63  ;;  %v3358_v63 = vld [vmem:[%s4030_s29 + $0xf4] ss:$8 sps:$4 sm:$0xff]  }
 0x124   : > { %v493_v1 = vld [vmem:[%s4014_s13 + $0x180] sm:$0xff] }
 0x125   : > { %1151 = vmatpush1.bf16.msra.mxu1 %v3280_v3  ;;  %v3333_v3 = vld [vmem:[%s4030_s29 + $0x60] ss:$8 sps:$4 sm:$0xff]  }
 0x126   : > { %1152 = vmatprep.subr.bf16.mxu1 %v3285_v6  ;;  %v3307_v6 = vld [vmem:[%s4022_s4 + $0x1c8] ss:$16 sps:$4 sm:$0xff]   ;;  %1986 = vmatpush1.bf16.msra.mxu0 %v3333_v3 }
 0x127   : > { %v3360_v3 = vld [vmem:[%s4030_s29 + $0xf0] ss:$8 sps:$4 sm:$0xff]  }
 0x128   : > { %1010 = vmatmul.mubr.bf16.gmra.mrb[12].mxu1 %v4187_v7 }
 0x129   : > { %1019 = vmatprep.mubr.bf16.mxu1 %v4189_v8  ;;  %1153 = vmatpush1.bf16.msra.mxu1 %v3283_v9  ;;  %v3312_v9 = vld [vmem:[%s4022_s4 + $0x1ec] ss:$16 sps:$4 sm:$0xff]  }
 0x12a   : > { %1154 = vmatprep.subr.bf16.mxu1 %v3288_v10  ;;  %v3334_v10 = vld [vmem:[%s4030_s29 + $0x74] ss:$8 sps:$4 sm:$0xff]  }
 0x12b   : > { %1987 = vmatprep.subr.bf16.mxu0 %v3334_v10 }
 0x12c   : > { %1988 = vmatpush1.bf16.msra.mxu0 %v3336_v11 }
 0x12d   : > { %1155 = vmatpush1.bf16.msra.mxu1 %v3286_v14  ;;  %v479_v14 = vld [vmem:[%s4014_s13 + $0x110] sm:$0xff]  ;;  %1989 = vmatprep.subr.bf16.mxu0 %v3337_v12  ;;  %v497_v12 = vld [vmem:[%s4014_s13 + $0x1a0] sm:$0xff] }
 0x12e   : > { %1156 = vmatprep.subr.bf16.mxu1 %v3291_v19  ;;  %v3339_v19 = vld [vmem:[%s4030_s29 + $0x80] ss:$8 sps:$4 sm:$0xff]  }
 0x130   : > { %1020 = vmatmul.mubr.bf16.gmra.mrb[16].mxu1 %v4203_v20  ;;  %1990 = vmatpush1.bf16.msra.mxu0 %v3339_v19 }
 0x131   : > { %1029 = vmatprep.mubr.bf16.mxu1 %v4205_v21  ;;  %1157 = vmatpush1.bf16.msra.mxu1 %v3289_v22  ;;  %v4274_v22 = vpack.c.bf16 %v479_v14, %v477_v13  ;;  %v499_v13 = vld [vmem:[%s4014_s13 + $0x1b0] sm:$0xff]  ;;  %v502_v14 = vld [vmem:[%s4014_s13 + $0x1c8] sm:$0xff] }
 0x132   : > { %1158 = vmatprep.subr.bf16.mxu1 %v3294_v23  ;;  %v4276_v23 = vpack.c.bf16 %v484_v18, %v482_v17  ;;  %1991 = vmatprep.subr.bf16.mxu0 %v3340_v24  ;;  %v3363_v17 = vld [vmem:[%s4030_s29 + $0x104] ss:$8 sps:$4 sm:$0xff]   ;;  %v4339_v18 = vpack.c.bf16 %v499_v13, %v497_v12  ;;  %v501_v24 = vld [vmem:[%s4014_s13 + $0x1c0] sm:$0xff] }
 0x133   : > { %v3370_v13 = vld [vmem:[%s4030_s29 + $0x130] ss:$8 sps:$4 sm:$0xff]  }
 0x134   : > { %1992 = vmatpush1.bf16.msra.mxu0 %v3342_v25  ;;  %v503_v25 = vld [vmem:[%s4014_s13 + $0x1d0] sm:$0xff] }
 0x135   : > { %1159 = vmatpush1.bf16.msra.mxu1 %v3292_v29  ;;  %v486_v29 = vld [vmem:[%s4014_s13 + $0x148] sm:$0xff]  ;;  %1993 = vmatprep.subr.bf16.mxu0 %v3343_v26 }
 0x136   : > { %1160 = vmatprep.subr.bf16.mxu1 %v3297_v32  ;;  %v4288_v32 = vpack.c.bf16 %v483_v28, %v481_v27  ;;  %v4290_v33 = vpack.c.bf16 %v488_v30, %v486_v29  ;;  %v506_v26 = vld [vmem:[%s4014_s13 + $0x1e8] sm:$0xff]  ;;  %v508_v27 = vld [vmem:[%s4014_s13 + $0x1f8] sm:$0xff]  ;;  %v4349_v28 = vpack.c.bf16 %v503_v25, %v501_v24  ;;  %v505_v30 = vld [vmem:[%s4014_s13 + $0x1e0] sm:$0xff] }
 0x137   : > { %v4351_v29 = vpack.c.bf16 %v508_v27, %v506_v26 }
 0x138   : > { %1030 = vmatmul.mubr.bf16.gmra.mrb[20].mxu1 %v4221_v34  ;;  %1994 = vmatpush1.bf16.msra.mxu0 %v3345_v31  ;;  %v507_v31 = vld [vmem:[%s4014_s13 + $0x1f0] sm:$0xff] }
 0x139   : > { %1039 = vmatprep.mubr.bf16.mxu1 %v4223_v35  ;;  %1161 = vmatpush1.bf16.msra.mxu1 %v3295_v36  ;;  %v3346_v36 = vld [vmem:[%s4030_s29 + $0xb4] ss:$8 sps:$4 sm:$0xff]  }
 0x13a   : > { %1162 = vmatprep.subr.bf16.mxu1 %v3300_v37  ;;  %v3348_v37 = vld [vmem:[%s4030_s29 + $0xb0] ss:$8 sps:$4 sm:$0xff]   ;;  %1995 = vmatprep.subr.bf16.mxu0 %v3346_v36  ;;  %v4357_v36 = vpack.c.bf16 %v507_v31, %v505_v30  ;;  %v3373_v31 = vld [vmem:[%s4030_s29 + $0x140] ss:$8 sps:$4 sm:$0xff]  }
 0x13c   : > { %1996 = vmatpush1.bf16.msra.mxu0 %v3348_v37 }
 0x13d   : > { %1163 = vmatpush1.bf16.msra.mxu1 %v3298_v45  ;;  %v3351_v45 = vld [vmem:[%s4030_s29 + $0xc0] ss:$8 sps:$4 sm:$0xff]   ;;  %1997 = vmatprep.subr.bf16.mxu0 %v3349_v38 }
 0x13e   : > { %1164 = vmatprep.subr.bf16.mxu1 %v3303_v48  ;;  %v3352_v48 = vld [vmem:[%s4030_s29 + $0xd4] ss:$8 sps:$4 sm:$0xff]   ;;  %v3361_v38 = vld [vmem:[%s4030_s29 + $0x100] ss:$8 sps:$4 sm:$0xff]  }
 0x140   : > { %1040 = vmatmul.mubr.bf16.gmra.mrb[24].mxu1 %v4239_v50  ;;  %1998 = vmatpush1.bf16.msra.mxu0 %v3351_v45 }
 0x141   : > { %1049 = vmatprep.mubr.bf16.mxu1 %v4241_v51  ;;  %1165 = vmatpush1.bf16.msra.mxu1 %v3301_v53  ;;  %v491_v53 = vld [vmem:[%s4014_s13 + $0x170] sm:$0xff] }
 0x142   : > { %1166 = vmatprep.subr.bf16.mxu1 %v3306_v55  ;;  %v3354_v55 = vld [vmem:[%s4030_s29 + $0xd0] ss:$8 sps:$4 sm:$0xff]   ;;  %1999 = vmatprep.subr.bf16.mxu0 %v3352_v48  ;;  %v4314_v58 = vpack.c.bf16 %v491_v53, %v489_v49 }
 0x143   : > { %v3364_v49 = vld [vmem:[%s4030_s29 + $0x110] ss:$8 sps:$4 sm:$0xff]  }
 0x144   : > { %2000 = vmatpush1.bf16.msra.mxu0 %v3354_v55 }
 0x145   : > { %1167 = vmatpush1.bf16.msra.mxu1 %v3304_v61  ;;  %v3357_v61 = vld [vmem:[%s4030_s29 + $0xe0] ss:$8 sps:$4 sm:$0xff]   ;;  %2001 = vmatprep.subr.bf16.mxu0 %v3355_v59 }
 0x146   : > { %1168 = vmatprep.subr.bf16.mxu1 %v3309_v2  ;;  %v495_v2 = vld [vmem:[%s4014_s13 + $0x190] sm:$0xff] }
 0x147   : > { %v4328_v10 = vpack.c.bf16 %v495_v2, %v493_v1 }
 0x148   : > { %1050 = vmatmul.mubr.bf16.gmra.mrb[28].mxu1 %v4257_v4  ;;  %2002 = vmatpush1.bf16.msra.mxu0 %v3357_v61 }
 0x149   : > { %1059 = vmatprep.mubr.bf16.mxu1 %v4259_v5  ;;  %1169 = vmatpush1.bf16.msra.mxu1 %v3307_v6  ;;  %v498_v6 = vld [vmem:[%s4014_s13 + $0x1a8] sm:$0xff] }
 0x14a   : > { %1170 = vmatprep.subr.bf16.mxu1 %v3312_v9  ;;  %v500_v9 = vld [vmem:[%s4014_s13 + $0x1b8] sm:$0xff]  ;;  %2003 = vmatprep.subr.bf16.mxu0 %v3358_v63  ;;  %v3367_v63 = vld [vmem:[%s4030_s29 + $0x120] ss:$8 sps:$4 sm:$0xff]  }
 0x14b   : > { %v4330_v11 = vpack.c.bf16 %v500_v9, %v498_v6 }
 0x14c   : > { %2004 = vmatpush1.bf16.msra.mxu0 %v3360_v3  ;;  %v3372_v3 = vld [vmem:[%s4030_s29 + $0x134] ss:$8 sps:$4 sm:$0xff]  }
 0x14d   : > { %1171 = vmatpush1.bf16.msra.mxu1 %v3310_v15  ;;  %v504_v15 = vld [vmem:[%s4014_s13 + $0x1d8] sm:$0xff]  ;;  %2166 = vmatprep.subr.bf16.mxu0 %v3363_v17  ;;  %v3375_v17 = vld [vmem:[%s4030_s29 + $0x144] ss:$8 sps:$4 sm:$0xff]  }
 0x14e   : > { %v4341_v19 = vpack.c.bf16 %v504_v15, %v502_v14 }
 0x150   : > { %1060 = vmatmul.mubr.bf16.gmra.mrb[32].mxu1 %v4274_v22 }
 0x151   : > { %1069 = vmatprep.mubr.bf16.mxu1 %v4276_v23 }
 0x158   : > { %1070 = vmatmul.mubr.bf16.gmra.mrb[36].mxu1 %v4288_v32 }
 0x159   : > { %1079 = vmatprep.mubr.bf16.mxu1 %v4290_v33 }
 0x160   : > { %1080 = vmatmul.mubr.bf16.gmra.mrb[40].mxu1 %v4302_v46 }
 0x161   : > { %1089 = vmatprep.mubr.bf16.mxu1 %v4304_v47 }
 0x168   : > { %1090 = vmatmul.mubr.bf16.gmra.mrb[44].mxu1 %v4314_v58 }
 0x169   : > { %1099 = vmatprep.mubr.bf16.mxu1 %v4317_v60 }
 0x170   : > { %1100 = vmatmul.mubr.bf16.gmra.mrb[48].mxu1 %v4328_v10 }
 0x171   : > { %1109 = vmatprep.mubr.bf16.mxu1 %v4330_v11 }
 0x178   : > { %1110 = vmatmul.mubr.bf16.gmra.mrb[52].mxu1 %v4339_v18 }
 0x179   : > { %1119 = vmatprep.mubr.bf16.mxu1 %v4341_v19 }
 0x180   : > { %1120 = vmatmul.mubr.bf16.gmra.mrb[56].mxu1 %v4349_v28 }
 0x181   : > { %1129 = vmatprep.mubr.bf16.mxu1 %v4351_v29 }
 0x188   : > { %1130 = vmatmul.mubr.bf16.gmra.mrb[60].mxu1 %v4357_v36 }
 0x189   : > { %1172 = vmatprep.mubr.bf16.mxu1 %v4118_v16  ;;  %v607_v16 = vlaneseq }
 0x190   : > { %1173 = vmatmul.mubr.bf16.vlgmr.msra.gmra.mrb[64].mxu1 %v4145_v41  ;;  %v4380_v41 = vshrl.u32 %v607_v16, 7 }
 0x191   : > { %1182 = vmatprep.mubr.bf16.mxu1 %v4148_v43 }
 0x192   : > { %v609_v43 = vsub.s32 0, %v4380_v41 }
 0x198   : > { %1183 = vmatmul.mubr.bf16.gmra.mrb[68].mxu1 %v4160_v52  ;;  %v4385_v52 = vld [vmem:[%s4028_s9] sm:$0xf] }
 0x199   : > { %1192 = vmatprep.mubr.bf16.mxu1 %v4163_v54  ;;  %v613_v54 = vsub.s32 1, %v4380_v41 }
 0x1a0   : > { %1193 = vmatmul.mubr.bf16.gmra.mrb[72].mxu1 %v4174_v62  ;;  %v4392_v62 = vrot.slane %v4385_v52, %v609_v43 }
 0x1a1   : > { %1202 = vmatprep.mubr.bf16.mxu1 %v4177_v0  ;;  %v4397_v0 = vrot.slane %v4385_v52, %v613_v54 }
 0x1a8   : > { %1203 = vmatmul.mubr.bf16.gmra.mrb[76].mxu1 %v4187_v7 }
 0x1a9   : > { %1212 = vmatprep.mubr.bf16.mxu1 %v4189_v8 }
 0x1b0   : > { %1213 = vmatmul.mubr.bf16.gmra.mrb[80].mxu1 %v4203_v20 }
 0x1b1   : > { %1222 = vmatprep.mubr.bf16.mxu1 %v4205_v21 }
 0x1b8   : > { %1223 = vmatmul.mubr.bf16.gmra.mrb[84].mxu1 %v4221_v34 }
 0x1b9   : > { %1232 = vmatprep.mubr.bf16.mxu1 %v4223_v35 }
 0x1c0   : > { %1233 = vmatmul.mubr.bf16.gmra.mrb[88].mxu1 %v4239_v50 }
 0x1c1   : > { %1242 = vmatprep.mubr.bf16.mxu1 %v4241_v51 }
 0x1c8   : > { %1243 = vmatmul.mubr.bf16.gmra.mrb[92].mxu1 %v4257_v4 }
 0x1c9   : > { %1252 = vmatprep.mubr.bf16.mxu1 %v4259_v5 }
 0x1d0   : > { %1253 = vmatmul.mubr.bf16.gmra.mrb[96].mxu1 %v4274_v22 }
 0x1d1   : > { %1262 = vmatprep.mubr.bf16.mxu1 %v4276_v23 }
 0x1d8   : > { %1263 = vmatmul.mubr.bf16.gmra.mrb[100].mxu1 %v4288_v32 }
 0x1d9   : > { %1272 = vmatprep.mubr.bf16.mxu1 %v4290_v33 }
 0x1e0   : > { %1273 = vmatmul.mubr.bf16.gmra.mrb[104].mxu1 %v4302_v46 }
 0x1e1   : > { %1282 = vmatprep.mubr.bf16.mxu1 %v4304_v47 }
 0x1e3   : > { %v981_v7 = vpop.f32.mrb[0].mxu1 }
 0x1e4   : > { %v982_v8 = vadd.f32 %v981_v7, %v4392_v62  ;;  %v983_v20 = vpop.f32.mrb[1].mxu1 }
 0x1e5   : > { %v984_v21 = vadd.f32 %v983_v20, %v4397_v0  ;;  %v985_v34 = vpop.f32.mrb[2].mxu1 }
 0x1e6   : > { %v986_v35 = vadd.f32 %v985_v34, %v4392_v62  ;;  %v987_v50 = vpop.f32.mrb[3].mxu1  ;;  %v1333_v4 = vmax.f32 %v982_v8, 0.0  ;;  %v3378_v8 = vld [vmem:[%s4030_s29 + $0x154] ss:$8 sps:$4 sm:$0xff]  }
 0x1e7   : > { %v988_v51 = vadd.f32 %v987_v50, %v4397_v0  ;;  %v1334_v22 = vmax.f32 %v984_v21, 0.0 }
 0x1e8   : > { %v1337_v5 = vmax.f32 %v986_v35, 0.0  ;;  %1283 = vmatmul.mubr.bf16.gmra.mrb[108].mxu1 %v4314_v58  ;;  %v3376_v35 = vld [vmem:[%s4030_s29 + $0x150] ss:$8 sps:$4 sm:$0xff]  }
 0x1e9   : > { %v1338_v23 = vmax.f32 %v988_v51, 0.0  ;;  %1292 = vmatprep.mubr.bf16.mxu1 %v4317_v60 }
 0x1ea   : > { %v1525_v32 = vpack.c.bf16 %v1337_v5, %v1333_v4  ;;  %v3381_v4 = vld [vmem:[%s4030_s29 + $0x164] ss:$8 sps:$4 sm:$0xff]  }
 0x1eb   : > { %v991_v33 = vpop.f32.mrb[4].mxu1  ;;  %v1526_v37 = vpack.c.bf16 %v1338_v23, %v1334_v22 }
 0x1ec   : > { %v992_v39 = vadd.f32 %v991_v33, %v4392_v62  ;;  %v993_v40 = vpop.f32.mrb[5].mxu1 }
 0x1ed   : > { %v994_v44 = vadd.f32 %v993_v40, %v4397_v0  ;;  %v995_v45 = vpop.f32.mrb[6].mxu1  ;;  %2005 = vmatprep.mubr.bf16.mxu0 %v1526_v37  ;;  %v3379_v37 = vld [vmem:[%s4030_s29 + $0x160] ss:$8 sps:$4 sm:$0xff]   ;;  %v3384_v40 = vld [vmem:[%s4030_s29 + $0x174] ss:$8 sps:$4 sm:$0xff]  }
 0x1ee   : > { %v996_v46 = vadd.f32 %v995_v45, %v4392_v62  ;;  %v997_v47 = vpop.f32.mrb[7].mxu1  ;;  %2006 = vmatmul.mubr.bf16.vlgmr.msra.gmra.mrb[0].mxu0 %v1525_v32  ;;  %v1341_v53 = vmax.f32 %v992_v39, 0.0 }
 0x1ef   : > { %v998_v48 = vadd.f32 %v997_v47, %v4397_v0  ;;  %2167 = vmatpush1.bf16.msra.mxu0 %v3361_v38  ;;  %v1342_v57 = vmax.f32 %v994_v44, 0.0 }
 0x1f0   : > { %v1345_v55 = vmax.f32 %v996_v46, 0.0  ;;  %1293 = vmatmul.mubr.bf16.gmra.mrb[112].mxu1 %v4328_v10  ;;  %2168 = vmatprep.subr.bf16.mxu0 %v3366_v42  ;;  %v3382_v46 = vld [vmem:[%s4030_s29 + $0x170] ss:$8 sps:$4 sm:$0xff]  }
 0x1f1   : > { %v1346_v58 = vmax.f32 %v998_v48, 0.0  ;;  %1302 = vmatprep.mubr.bf16.mxu1 %v4330_v11 }
 0x1f2   : > { %v1529_v59 = vpack.c.bf16 %v1345_v55, %v1341_v53 }
 0x1f3   : > { %v1530_v60 = vpack.c.bf16 %v1346_v58, %v1342_v57  ;;  %v1001_v61 = vpop.f32.mrb[8].mxu1  ;;  %2169 = vmatpush1.bf16.msra.mxu0 %v3364_v49  ;;  %v3387_v49 = vld [vmem:[%s4030_s29 + $0x184] ss:$8 sps:$4 sm:$0xff]  }
 0x1f4   : > { %v1002_v1 = vadd.f32 %v1001_v61, %v4392_v62  ;;  %v1003_v2 = vpop.f32.mrb[9].mxu1  ;;  %2170 = vmatprep.subr.bf16.mxu0 %v3369_v56 }
 0x1f5   : > { %v1004_v6 = vadd.f32 %v1003_v2, %v4397_v0  ;;  %v1005_v9 = vpop.f32.mrb[10].mxu1  ;;  %2015 = vmatprep.mubr.bf16.mxu0 %v1530_v60 }
 0x1f6   : > { %v1006_v10 = vadd.f32 %v1005_v9, %v4392_v62  ;;  %v1007_v12 = vpop.f32.mrb[11].mxu1  ;;  %2016 = vmatmul.mubr.bf16.gmra.mrb[4].mxu0 %v1529_v59  ;;  %v1349_v14 = vmax.f32 %v1002_v1, 0.0  ;;  %v3385_v59 = vld [vmem:[%s4030_s29 + $0x180] ss:$8 sps:$4 sm:$0xff]   ;;  %v3388_v9 = vld [vmem:[%s4030_s29 + $0x190] ss:$8 sps:$4 sm:$0xff]  }
 0x1f7   : > { %v1008_v11 = vadd.f32 %v1007_v12, %v4397_v0  ;;  %2171 = vmatpush1.bf16.msra.mxu0 %v3367_v63  ;;  %v1350_v24 = vmax.f32 %v1004_v6, 0.0  ;;  %v3390_v63 = vld [vmem:[%s4030_s29 + $0x194] ss:$8 sps:$4 sm:$0xff]  }
 0x1f8   : > { %v1353_v15 = vmax.f32 %v1006_v10, 0.0  ;;  %1303 = vmatmul.mubr.bf16.gmra.mrb[116].mxu1 %v4339_v18  ;;  %2172 = vmatprep.subr.bf16.mxu0 %v3372_v3 }
 0x1f9   : > { %v1354_v25 = vmax.f32 %v1008_v11, 0.0  ;;  %1312 = vmatprep.mubr.bf16.mxu1 %v4341_v19  ;;  %v3393_v11 = vld [vmem:[%s4030_s29 + $0x1a4] ss:$8 sps:$4 sm:$0xff]  }
 0x1fa   : > { %v1533_v26 = vpack.c.bf16 %v1353_v15, %v1349_v14 }
 0x1fb   : > { %v1534_v27 = vpack.c.bf16 %v1354_v25, %v1350_v24  ;;  %v1011_v30 = vpop.f32.mrb[12].mxu1  ;;  %2173 = vmatpush1.bf16.msra.mxu0 %v3370_v13  ;;  %v3391_v25 = vld [vmem:[%s4030_s29 + $0x1a0] ss:$8 sps:$4 sm:$0xff]  }
 0x1fc   : > { %v1012_v16 = vadd.f32 %v1011_v30, %v4392_v62  ;;  %v1013_v7 = vpop.f32.mrb[13].mxu1  ;;  %2174 = vmatprep.subr.bf16.mxu0 %v3375_v17  ;;  %v3396_v30 = vld [vmem:[%s4030_s29 + $0x1b4] ss:$8 sps:$4 sm:$0xff]  }
 0x1fd   : > { %v1014_v18 = vadd.f32 %v1013_v7, %v4397_v0  ;;  %v1015_v20 = vpop.f32.mrb[14].mxu1  ;;  %2025 = vmatprep.mubr.bf16.mxu0 %v1534_v27 }
 0x1fe   : > { %v1016_v21 = vadd.f32 %v1015_v20, %v4392_v62  ;;  %v1017_v34 = vpop.f32.mrb[15].mxu1  ;;  %2026 = vmatmul.mubr.bf16.gmra.mrb[8].mxu0 %v1533_v26  ;;  %v1357_v50 = vmax.f32 %v1012_v16, 0.0  ;;  %v3394_v20 = vld [vmem:[%s4030_s29 + $0x1b0] ss:$8 sps:$4 sm:$0xff]  }
 0x1ff   : > { %v1018_v19 = vadd.f32 %v1017_v34, %v4397_v0  ;;  %2175 = vmatpush1.bf16.msra.mxu0 %v3373_v31  ;;  %v1358_v5 = vmax.f32 %v1014_v18, 0.0 }
 0x200   : > { %v1361_v51 = vmax.f32 %v1016_v21, 0.0  ;;  %1313 = vmatmul.mubr.bf16.gmra.mrb[120].mxu1 %v4349_v28  ;;  %2176 = vmatprep.subr.bf16.mxu0 %v3378_v8 }
 0x201   : > { %v1362_v22 = vmax.f32 %v1018_v19, 0.0  ;;  %1322 = vmatprep.mubr.bf16.mxu1 %v4351_v29  ;;  %v3399_v19 = vld [vmem:[%s4030_s29 + $0x1c4] ss:$8 sps:$4 sm:$0xff]  }
 0x202   : > { %v1537_v23 = vpack.c.bf16 %v1361_v51, %v1357_v50 }
 0x203   : > { %v1538_v32 = vpack.c.bf16 %v1362_v22, %v1358_v5  ;;  %v1021_v33 = vpop.f32.mrb[16].mxu1  ;;  %2177 = vmatpush1.bf16.msra.mxu0 %v3376_v35  ;;  %v3397_v22 = vld [vmem:[%s4030_s29 + $0x1c0] ss:$8 sps:$4 sm:$0xff]  }
 0x204   : > { %v1022_v38 = vadd.f32 %v1021_v33, %v4392_v62  ;;  %v1023_v39 = vpop.f32.mrb[17].mxu1  ;;  %2178 = vmatprep.subr.bf16.mxu0 %v3381_v4  ;;  %v3402_v33 = vld [vmem:[%s4030_s29 + $0x1d4] ss:$8 sps:$4 sm:$0xff]  }
 0x205   : > { %v1024_v28 = vadd.f32 %v1023_v39, %v4397_v0  ;;  %v1025_v42 = vpop.f32.mrb[18].mxu1  ;;  %2035 = vmatprep.mubr.bf16.mxu0 %v1538_v32 }
 0x206   : > { %v1026_v44 = vadd.f32 %v1025_v42, %v4392_v62  ;;  %v1027_v45 = vpop.f32.mrb[19].mxu1  ;;  %2036 = vmatmul.mubr.bf16.gmra.mrb[12].mxu0 %v1537_v23  ;;  %v1365_v47 = vmax.f32 %v1022_v38, 0.0  ;;  %v3400_v42 = vld [vmem:[%s4030_s29 + $0x1d0] ss:$8 sps:$4 sm:$0xff]  }
 0x207   : > { %v1028_v29 = vadd.f32 %v1027_v45, %v4397_v0  ;;  %2179 = vmatpush1.bf16.msra.mxu0 %v3379_v37  ;;  %v1366_v53 = vmax.f32 %v1024_v28, 0.0 }
 0x208   : > { %v1369_v48 = vmax.f32 %v1026_v44, 0.0  ;;  %1323 = vmatmul.mubr.bf16.gmra.mrb[124].mxu1 %v4357_v36  ;;  %2180 = vmatprep.subr.bf16.mxu0 %v3384_v40 }
 0x209   : > { %v1370_v55 = vmax.f32 %v1028_v29, 0.0  ;;  %v3405_v29 = vld [vmem:[%s4030_s29 + $0x1e4] ss:$8 sps:$4 sm:$0xff]  }
 0x20a   : > { %v1541_v56 = vpack.c.bf16 %v1369_v48, %v1365_v47 }
 0x20b   : > { %v1542_v57 = vpack.c.bf16 %v1370_v55, %v1366_v53  ;;  %v1031_v58 = vpop.f32.mrb[20].mxu1  ;;  %2181 = vmatpush1.bf16.msra.mxu0 %v3382_v46  ;;  %v3403_v55 = vld [vmem:[%s4030_s29 + $0x1e0] ss:$8 sps:$4 sm:$0xff]  }
 0x20c   : > { %v1032_v60 = vadd.f32 %v1031_v58, %v4392_v62  ;;  %v1033_v61 = vpop.f32.mrb[21].mxu1  ;;  %2182 = vmatprep.subr.bf16.mxu0 %v3387_v49  ;;  %v3408_v58 = vld [vmem:[%s4030_s29 + $0x1f4] ss:$8 sps:$4 sm:$0xff]  }
 0x20d   : > { %v1034_v1 = vadd.f32 %v1033_v61, %v4397_v0  ;;  %v1035_v2 = vpop.f32.mrb[22].mxu1  ;;  %2045 = vmatprep.mubr.bf16.mxu0 %v1542_v57 }
 0x20e   : > { %v1036_v36 = vadd.f32 %v1035_v2, %v4392_v62  ;;  %v1037_v3 = vpop.f32.mrb[23].mxu1  ;;  %2046 = vmatmul.mubr.bf16.gmra.mrb[16].mxu0 %v1541_v56  ;;  %v1373_v10 = vmax.f32 %v1032_v60, 0.0  ;;  %v3406_v2 = vld [vmem:[%s4030_s29 + $0x1f0] ss:$8 sps:$4 sm:$0xff]  }
 0x20f   : > { %v1038_v6 = vadd.f32 %v1037_v3, %v4397_v0  ;;  %2183 = vmatpush1.bf16.msra.mxu0 %v3385_v59  ;;  %v1374_v13 = vmax.f32 %v1034_v1, 0.0 }
 0x210   : > { %v1377_v12 = vmax.f32 %v1036_v36, 0.0  ;;  %2184 = vmatprep.subr.bf16.mxu0 %v3390_v63 }
 0x211   : > { %v1378_v14 = vmax.f32 %v1038_v6, 0.0 }
 0x212   : > { %v1545_v15 = vpack.c.bf16 %v1377_v12, %v1373_v10 }
 0x213   : > { %v1546_v17 = vpack.c.bf16 %v1378_v14, %v1374_v13  ;;  %v1041_v24 = vpop.f32.mrb[24].mxu1  ;;  %2185 = vmatpush1.bf16.msra.mxu0 %v3388_v9 }
 0x214   : > { %v1042_v26 = vadd.f32 %v1041_v24, %v4392_v62  ;;  %v1043_v27 = vpop.f32.mrb[25].mxu1  ;;  %2186 = vmatprep.subr.bf16.mxu0 %v3393_v11 }
 0x215   : > { %v1044_v31 = vadd.f32 %v1043_v27, %v4397_v0  ;;  %v1045_v16 = vpop.f32.mrb[26].mxu1  ;;  %2055 = vmatprep.mubr.bf16.mxu0 %v1546_v17 }
 0x216   : > { %v1046_v7 = vadd.f32 %v1045_v16, %v4392_v62  ;;  %v1047_v8 = vpop.f32.mrb[27].mxu1  ;;  %2056 = vmatmul.mubr.bf16.gmra.mrb[20].mxu0 %v1545_v15  ;;  %v1381_v21 = vmax.f32 %v1042_v26, 0.0 }
 0x217   : > { %v1048_v18 = vadd.f32 %v1047_v8, %v4397_v0  ;;  %2187 = vmatpush1.bf16.msra.mxu0 %v3391_v25  ;;  %v1382_v35 = vmax.f32 %v1044_v31, 0.0 }
 0x218   : > { %v1385_v34 = vmax.f32 %v1046_v7, 0.0  ;;  %2188 = vmatprep.subr.bf16.mxu0 %v3396_v30 }
 0x219   : > { %v1386_v50 = vmax.f32 %v1048_v18, 0.0 }
 0x21a   : > { %v1549_v51 = vpack.c.bf16 %v1385_v34, %v1381_v21 }
 0x21b   : > { %v1550_v4 = vpack.c.bf16 %v1386_v50, %v1382_v35  ;;  %v1051_v5 = vpop.f32.mrb[28].mxu1  ;;  %2189 = vmatpush1.bf16.msra.mxu0 %v3394_v20 }
 0x21c   : > { %v1052_v23 = vadd.f32 %v1051_v5, %v4392_v62  ;;  %v1053_v32 = vpop.f32.mrb[29].mxu1  ;;  %2190 = vmatprep.subr.bf16.mxu0 %v3399_v19 }
 0x21d   : > { %v1054_v37 = vadd.f32 %v1053_v32, %v4397_v0  ;;  %v1055_v38 = vpop.f32.mrb[30].mxu1  ;;  %2065 = vmatprep.mubr.bf16.mxu0 %v1550_v4 }
 0x21e   : > { %v1056_v39 = vadd.f32 %v1055_v38, %v4392_v62  ;;  %v1057_v40 = vpop.f32.mrb[31].mxu1  ;;  %2066 = vmatmul.mubr.bf16.gmra.mrb[24].mxu0 %v1549_v51  ;;  %v1389_v44 = vmax.f32 %v1052_v23, 0.0 }
 0x21f   : > { %v1058_v28 = vadd.f32 %v1057_v40, %v4397_v0  ;;  %2191 = vmatpush1.bf16.msra.mxu0 %v3397_v22  ;;  %v1390_v46 = vmax.f32 %v1054_v37, 0.0 }
 0x220   : > { %v1393_v45 = vmax.f32 %v1056_v39, 0.0  ;;  %2192 = vmatprep.subr.bf16.mxu0 %v3402_v33 }
 0x221   : > { %v1394_v47 = vmax.f32 %v1058_v28, 0.0 }
 0x222   : > { %v1553_v48 = vpack.c.bf16 %v1393_v45, %v1389_v44 }
 0x223   : > { %v1554_v49 = vpack.c.bf16 %v1394_v47, %v1390_v46  ;;  %v1061_v53 = vpop.f32.mrb[32].mxu1  ;;  %2193 = vmatpush1.bf16.msra.mxu0 %v3400_v42 }
 0x224   : > { %v1062_v56 = vadd.f32 %v1061_v53, %v4392_v62  ;;  %v1063_v57 = vpop.f32.mrb[33].mxu1  ;;  %2194 = vmatprep.subr.bf16.mxu0 %v3405_v29 }
 0x225   : > { %v1064_v59 = vadd.f32 %v1063_v57, %v4397_v0  ;;  %v1065_v60 = vpop.f32.mrb[34].mxu1  ;;  %2075 = vmatprep.mubr.bf16.mxu0 %v1554_v49 }
 0x226   : > { %v1066_v61 = vadd.f32 %v1065_v60, %v4392_v62  ;;  %v1067_v63 = vpop.f32.mrb[35].mxu1  ;;  %2076 = vmatmul.mubr.bf16.gmra.mrb[28].mxu0 %v1553_v48  ;;  %v1397_v36 = vmax.f32 %v1062_v56, 0.0 }
 0x227   : > { %v1068_v1 = vadd.f32 %v1067_v63, %v4397_v0  ;;  %2195 = vmatpush1.bf16.msra.mxu0 %v3403_v55  ;;  %v1398_v6 = vmax.f32 %v1064_v59, 0.0 }
 0x228   : > { %v1401_v3 = vmax.f32 %v1066_v61, 0.0  ;;  %2196 = vmatprep.subr.bf16.mxu0 %v3408_v58 }
 0x229   : > { %v1402_v9 = vmax.f32 %v1068_v1, 0.0 }
 0x22a   : > { %v1557_v10 = vpack.c.bf16 %v1401_v3, %v1397_v36 }
 0x22b   : > { %v1558_v12 = vpack.c.bf16 %v1402_v9, %v1398_v6  ;;  %v1071_v11 = vpop.f32.mrb[36].mxu1  ;;  %2197 = vmatpush1.bf16.msra.mxu0 %v3406_v2 }
 0x22c   : > { %v1072_v13 = vadd.f32 %v1071_v11, %v4392_v62  ;;  %v1073_v14 = vpop.f32.mrb[37].mxu1 }
 0x22d   : > { %v1074_v15 = vadd.f32 %v1073_v14, %v4397_v0  ;;  %v1075_v17 = vpop.f32.mrb[38].mxu1  ;;  %2085 = vmatprep.mubr.bf16.mxu0 %v1558_v12 }
 0x22e   : > { %v1076_v24 = vadd.f32 %v1075_v17, %v4392_v62  ;;  %v1077_v25 = vpop.f32.mrb[39].mxu1  ;;  %2086 = vmatmul.mubr.bf16.gmra.mrb[32].mxu0 %v1557_v10  ;;  %v1405_v27 = vmax.f32 %v1072_v13, 0.0 }
 0x22f   : > { %v1078_v26 = vadd.f32 %v1077_v25, %v4397_v0  ;;  %v1406_v31 = vmax.f32 %v1074_v15, 0.0 }
 0x230   : > { %v1409_v30 = vmax.f32 %v1076_v24, 0.0 }
 0x231   : > { %v1410_v16 = vmax.f32 %v1078_v26, 0.0 }
 0x232   : > { %v1561_v7 = vpack.c.bf16 %v1409_v30, %v1405_v27 }
 0x233   : > { %v1562_v8 = vpack.c.bf16 %v1410_v16, %v1406_v31  ;;  %v1081_v18 = vpop.f32.mrb[40].mxu1 }
 0x234   : > { %v1082_v20 = vadd.f32 %v1081_v18, %v4392_v62  ;;  %v1083_v21 = vpop.f32.mrb[41].mxu1 }
 0x235   : > { %v1084_v34 = vadd.f32 %v1083_v21, %v4397_v0  ;;  %v1085_v19 = vpop.f32.mrb[42].mxu1  ;;  %2095 = vmatprep.mubr.bf16.mxu0 %v1562_v8 }
 0x236   : > { %v1086_v35 = vadd.f32 %v1085_v19, %v4392_v62  ;;  %v1087_v50 = vpop.f32.mrb[43].mxu1  ;;  %2096 = vmatmul.mubr.bf16.gmra.mrb[36].mxu0 %v1561_v7  ;;  %v1413_v4 = vmax.f32 %v1082_v20, 0.0 }
 0x237   : > { %v1088_v51 = vadd.f32 %v1087_v50, %v4397_v0  ;;  %v1414_v22 = vmax.f32 %v1084_v34, 0.0 }
 0x238   : > { %v1417_v5 = vmax.f32 %v1086_v35, 0.0 }
 0x239   : > { %v1418_v23 = vmax.f32 %v1088_v51, 0.0 }
 0x23a   : > { %v1565_v32 = vpack.c.bf16 %v1417_v5, %v1413_v4 }
 0x23b   : > { %v1566_v33 = vpack.c.bf16 %v1418_v23, %v1414_v22  ;;  %v1091_v37 = vpop.f32.mrb[44].mxu1 }
 0x23c   : > { %v1092_v38 = vadd.f32 %v1091_v37, %v4392_v62  ;;  %v1093_v39 = vpop.f32.mrb[45].mxu1 }
 0x23d   : > { %v1094_v40 = vadd.f32 %v1093_v39, %v4397_v0  ;;  %v1095_v28 = vpop.f32.mrb[46].mxu1  ;;  %2105 = vmatprep.mubr.bf16.mxu0 %v1566_v33 }
 0x23e   : > { %v1096_v42 = vadd.f32 %v1095_v28, %v4392_v62  ;;  %v1097_v44 = vpop.f32.mrb[47].mxu1  ;;  %2106 = vmatmul.mubr.bf16.gmra.mrb[40].mxu0 %v1565_v32  ;;  %v1421_v29 = vmax.f32 %v1092_v38, 0.0  ;;  %v617_v38 = vsub.s32 2, %v4380_v41  ;;  %v621_v28 = vsub.s32 3, %v4380_v41 }
 0x23f   : > { %v1098_v45 = vadd.f32 %v1097_v44, %v4397_v0  ;;  %v1422_v47 = vmax.f32 %v1094_v40, 0.0 }
 0x240   : > { %v1425_v46 = vmax.f32 %v1096_v42, 0.0 }
 0x241   : > { %v1426_v48 = vmax.f32 %v1098_v45, 0.0 }
 0x242   : > { %v1569_v49 = vpack.c.bf16 %v1425_v46, %v1421_v29 }
 0x243   : > { %v1570_v53 = vpack.c.bf16 %v1426_v48, %v1422_v47  ;;  %v1101_v55 = vpop.f32.mrb[48].mxu1  ;;  %v4507_v47 = vrot.slane %v4385_v52, %v617_v38 }
 0x244   : > { %v1102_v56 = vadd.f32 %v1101_v55, %v4392_v62  ;;  %v1103_v57 = vpop.f32.mrb[49].mxu1 }
 0x245   : > { %v1104_v58 = vadd.f32 %v1103_v57, %v4397_v0  ;;  %v1105_v59 = vpop.f32.mrb[50].mxu1  ;;  %2115 = vmatprep.mubr.bf16.mxu0 %v1570_v53  ;;  %v4510_v53 = vrot.slane %v4385_v52, %v621_v28 }
 0x246   : > { %v1106_v60 = vadd.f32 %v1105_v59, %v4392_v62  ;;  %v1107_v61 = vpop.f32.mrb[51].mxu1  ;;  %2116 = vmatmul.mubr.bf16.gmra.mrb[44].mxu0 %v1569_v49  ;;  %v1429_v1 = vmax.f32 %v1102_v56, 0.0 }
 0x247   : > { %v1108_v63 = vadd.f32 %v1107_v61, %v4397_v0  ;;  %v1430_v36 = vmax.f32 %v1104_v58, 0.0 }
 0x248   : > { %v1433_v2 = vmax.f32 %v1106_v60, 0.0 }
 0x249   : > { %v1434_v3 = vmax.f32 %v1108_v63, 0.0 }
 0x24a   : > { %v1573_v6 = vpack.c.bf16 %v1433_v2, %v1429_v1 }
 0x24b   : > { %v1574_v9 = vpack.c.bf16 %v1434_v3, %v1430_v36  ;;  %v1111_v10 = vpop.f32.mrb[52].mxu1 }
 0x24c   : > { %v1112_v12 = vadd.f32 %v1111_v10, %v4392_v62  ;;  %v1113_v11 = vpop.f32.mrb[53].mxu1 }
 0x24d   : > { %v1114_v13 = vadd.f32 %v1113_v11, %v4397_v0  ;;  %v1115_v14 = vpop.f32.mrb[54].mxu1  ;;  %2125 = vmatprep.mubr.bf16.mxu0 %v1574_v9 }
 0x24e   : > { %v1116_v15 = vadd.f32 %v1115_v14, %v4392_v62  ;;  %v1117_v17 = vpop.f32.mrb[55].mxu1  ;;  %2126 = vmatmul.mubr.bf16.gmra.mrb[48].mxu0 %v1573_v6  ;;  %v1437_v25 = vmax.f32 %v1112_v12, 0.0 }
 0x24f   : > { %v1118_v24 = vadd.f32 %v1117_v17, %v4397_v0  ;;  %v1438_v27 = vmax.f32 %v1114_v13, 0.0 }
 0x250   : > { %v1441_v26 = vmax.f32 %v1116_v15, 0.0 }
 0x251   : > { %v1442_v30 = vmax.f32 %v1118_v24, 0.0 }
 0x252   : > { %v1577_v31 = vpack.c.bf16 %v1441_v26, %v1437_v25 }
 0x253   : > { %v1578_v16 = vpack.c.bf16 %v1442_v30, %v1438_v27  ;;  %v1121_v7 = vpop.f32.mrb[56].mxu1 }
 0x254   : > { %v1122_v8 = vadd.f32 %v1121_v7, %v4392_v62  ;;  %v1123_v18 = vpop.f32.mrb[57].mxu1 }
 0x255   : > { %v1124_v20 = vadd.f32 %v1123_v18, %v4397_v0  ;;  %v1125_v21 = vpop.f32.mrb[58].mxu1  ;;  %2135 = vmatprep.mubr.bf16.mxu0 %v1578_v16 }
 0x256   : > { %v1126_v34 = vadd.f32 %v1125_v21, %v4392_v62  ;;  %v1127_v19 = vpop.f32.mrb[59].mxu1  ;;  %2136 = vmatmul.mubr.bf16.gmra.mrb[52].mxu0 %v1577_v31  ;;  %v1445_v50 = vmax.f32 %v1122_v8, 0.0 }
 0x257   : > { %v1128_v35 = vadd.f32 %v1127_v19, %v4397_v0  ;;  %v1446_v4 = vmax.f32 %v1124_v20, 0.0 }
 0x258   : > { %v1449_v51 = vmax.f32 %v1126_v34, 0.0 }
 0x259   : > { %v1450_v5 = vmax.f32 %v1128_v35, 0.0 }
 0x25a   : > { %v1581_v22 = vpack.c.bf16 %v1449_v51, %v1445_v50 }
 0x25b   : > { %v1582_v23 = vpack.c.bf16 %v1450_v5, %v1446_v4  ;;  %v1131_v32 = vpop.f32.mrb[60].mxu1 }
 0x25c   : > { %v1132_v33 = vadd.f32 %v1131_v32, %v4392_v62  ;;  %v1133_v37 = vpop.f32.mrb[61].mxu1 }
 0x25d   : > { %v1134_v39 = vadd.f32 %v1133_v37, %v4397_v0  ;;  %v1135_v40 = vpop.f32.mrb[62].mxu1  ;;  %2145 = vmatprep.mubr.bf16.mxu0 %v1582_v23 }
 0x25e   : > { %v1136_v42 = vadd.f32 %v1135_v40, %v4392_v62  ;;  %v1137_v44 = vpop.f32.mrb[63].mxu1  ;;  %2146 = vmatmul.mubr.bf16.gmra.mrb[56].mxu0 %v1581_v22  ;;  %v1453_v29 = vmax.f32 %v1132_v33, 0.0 }
 0x25f   : > { %v1138_v45 = vadd.f32 %v1137_v44, %v4397_v0  ;;  %v1454_v48 = vmax.f32 %v1134_v39, 0.0 }
 0x260   : > { %v1457_v46 = vmax.f32 %v1136_v42, 0.0 }
 0x261   : > { %v1458_v49 = vmax.f32 %v1138_v45, 0.0 }
 0x262   : > { %v1585_v55 = vpack.c.bf16 %v1457_v46, %v1453_v29 }
 0x263   : > { %v1586_v56 = vpack.c.bf16 %v1458_v49, %v1454_v48  ;;  %v1174_v57 = vpop.f32.mrb[64].mxu1 }
 0x264   : > { %v1175_v58 = vadd.f32 %v1174_v57, %v4507_v47  ;;  %v1176_v62 = vpop.f32.mrb[65].mxu1 }
 0x265   : > { %v1177_v59 = vadd.f32 %v1176_v62, %v4510_v53  ;;  %v1178_v60 = vpop.f32.mrb[66].mxu1  ;;  %2155 = vmatprep.mubr.bf16.mxu0 %v1586_v56 }
 0x266   : > { %v1179_v0 = vadd.f32 %v1178_v60, %v4507_v47  ;;  %v1180_v61 = vpop.f32.mrb[67].mxu1  ;;  %2156 = vmatmul.mubr.bf16.gmra.mrb[60].mxu0 %v1585_v55  ;;  %v1335_v1 = vmax.f32 %v1175_v58, 0.0 }
 0x267   : > { %v1181_v63 = vadd.f32 %v1180_v61, %v4510_v53  ;;  %v1336_v52 = vmax.f32 %v1177_v59, 0.0 }
 0x268   : > { %v1339_v2 = vmax.f32 %v1179_v0, 0.0 }
 0x269   : > { %v1340_v36 = vmax.f32 %v1181_v63, 0.0 }
 0x26a   : > { %v1527_v3 = vpack.c.bf16 %v1339_v2, %v1335_v1 }
 0x26b   : > { %v1528_v6 = vpack.c.bf16 %v1340_v36, %v1336_v52  ;;  %v1184_v9 = vpop.f32.mrb[68].mxu1 }
 0x26c   : > { %v1185_v10 = vadd.f32 %v1184_v9, %v4507_v47  ;;  %v1186_v12 = vpop.f32.mrb[69].mxu1 }
 0x26d   : > { %v1187_v11 = vadd.f32 %v1186_v12, %v4510_v53  ;;  %v1188_v13 = vpop.f32.mrb[70].mxu1  ;;  %2198 = vmatprep.mubr.bf16.mxu0 %v1528_v6 }
 0x26e   : > { %v1189_v14 = vadd.f32 %v1188_v13, %v4507_v47  ;;  %v1190_v15 = vpop.f32.mrb[71].mxu1  ;;  %2199 = vmatmul.mubr.bf16.vlgmr.msra.gmra.mrb[0].mxu0 %v1527_v3  ;;  %v1343_v24 = vmax.f32 %v1185_v10, 0.0 }
 0x26f   : > { %v1191_v17 = vadd.f32 %v1190_v15, %v4510_v53  ;;  %v1344_v26 = vmax.f32 %v1187_v11, 0.0 }
 0x270   : > { %v1347_v25 = vmax.f32 %v1189_v14, 0.0 }
 0x271   : > { %v1348_v27 = vmax.f32 %v1191_v17, 0.0 }
 0x272   : > { %v1531_v30 = vpack.c.bf16 %v1347_v25, %v1343_v24 }
 0x273   : > { %v1532_v31 = vpack.c.bf16 %v1348_v27, %v1344_v26  ;;  %v1194_v16 = vpop.f32.mrb[72].mxu1 }
 0x274   : > { %v1195_v7 = vadd.f32 %v1194_v16, %v4507_v47  ;;  %v1196_v8 = vpop.f32.mrb[73].mxu1 }
 0x275   : > { %v1197_v18 = vadd.f32 %v1196_v8, %v4510_v53  ;;  %v1198_v20 = vpop.f32.mrb[74].mxu1  ;;  %2208 = vmatprep.mubr.bf16.mxu0 %v1532_v31 }
 0x276   : > { %v1199_v21 = vadd.f32 %v1198_v20, %v4507_v47  ;;  %v1200_v34 = vpop.f32.mrb[75].mxu1  ;;  %2209 = vmatmul.mubr.bf16.gmra.mrb[4].mxu0 %v1531_v30  ;;  %v1351_v35 = vmax.f32 %v1195_v7, 0.0 }
 0x277   : > { %v1201_v19 = vadd.f32 %v1200_v34, %v4510_v53  ;;  %v1352_v51 = vmax.f32 %v1197_v18, 0.0 }
 0x278   : > { %v1355_v50 = vmax.f32 %v1199_v21, 0.0 }
 0x279   : > { %v1356_v4 = vmax.f32 %v1201_v19, 0.0 }
 0x27a   : > { %v1535_v5 = vpack.c.bf16 %v1355_v50, %v1351_v35 }
 0x27b   : > { %v1536_v22 = vpack.c.bf16 %v1356_v4, %v1352_v51  ;;  %v1204_v23 = vpop.f32.mrb[76].mxu1 }
 0x27c   : > { %v1205_v32 = vadd.f32 %v1204_v23, %v4507_v47  ;;  %v1206_v33 = vpop.f32.mrb[77].mxu1 }
 0x27d   : > { %v1207_v37 = vadd.f32 %v1206_v33, %v4510_v53  ;;  %v1208_v38 = vpop.f32.mrb[78].mxu1  ;;  %2218 = vmatprep.mubr.bf16.mxu0 %v1536_v22 }
 0x27e   : > { %v1209_v39 = vadd.f32 %v1208_v38, %v4507_v47  ;;  %v1210_v40 = vpop.f32.mrb[79].mxu1  ;;  %2219 = vmatmul.mubr.bf16.gmra.mrb[8].mxu0 %v1535_v5  ;;  %v1359_v42 = vmax.f32 %v1205_v32, 0.0 }
 0x27f   : > { %v1211_v28 = vadd.f32 %v1210_v40, %v4510_v53  ;;  %v1360_v45 = vmax.f32 %v1207_v37, 0.0 }
 0x280   : > { %v1363_v44 = vmax.f32 %v1209_v39, 0.0 }
 0x281   : > { %v1364_v29 = vmax.f32 %v1211_v28, 0.0 }
 0x282   : > { %v1539_v46 = vpack.c.bf16 %v1363_v44, %v1359_v42 }
 0x283   : > { %v1540_v48 = vpack.c.bf16 %v1364_v29, %v1360_v45  ;;  %v1214_v49 = vpop.f32.mrb[80].mxu1 }
 0x284   : > { %v1215_v55 = vadd.f32 %v1214_v49, %v4507_v47  ;;  %v1216_v56 = vpop.f32.mrb[81].mxu1 }
 0x285   : > { %v1217_v57 = vadd.f32 %v1216_v56, %v4510_v53  ;;  %v1218_v58 = vpop.f32.mrb[82].mxu1  ;;  %2228 = vmatprep.mubr.bf16.mxu0 %v1540_v48 }
 0x286   : > { %v1219_v62 = vadd.f32 %v1218_v58, %v4507_v47  ;;  %v1220_v59 = vpop.f32.mrb[83].mxu1  ;;  %2229 = vmatmul.mubr.bf16.gmra.mrb[12].mxu0 %v1539_v46  ;;  %v1367_v0 = vmax.f32 %v1215_v55, 0.0 }
 0x287   : > { %v1221_v60 = vadd.f32 %v1220_v59, %v4510_v53  ;;  %v1368_v63 = vmax.f32 %v1217_v57, 0.0 }
 0x288   : > { %v1371_v61 = vmax.f32 %v1219_v62, 0.0 }
 0x289   : > { %v1372_v1 = vmax.f32 %v1221_v60, 0.0 }
 0x28a   : > { %v1543_v2 = vpack.c.bf16 %v1371_v61, %v1367_v0 }
 0x28b   : > { %v1544_v52 = vpack.c.bf16 %v1372_v1, %v1368_v63  ;;  %v1224_v36 = vpop.f32.mrb[84].mxu1 }
 0x28c   : > { %v1225_v3 = vadd.f32 %v1224_v36, %v4507_v47  ;;  %v1226_v6 = vpop.f32.mrb[85].mxu1 }
 0x28d   : > { %v1227_v9 = vadd.f32 %v1226_v6, %v4510_v53  ;;  %v1228_v10 = vpop.f32.mrb[86].mxu1  ;;  %2238 = vmatprep.mubr.bf16.mxu0 %v1544_v52 }
 0x28e   : > { %v1229_v12 = vadd.f32 %v1228_v10, %v4507_v47  ;;  %v1230_v11 = vpop.f32.mrb[87].mxu1  ;;  %2239 = vmatmul.mubr.bf16.gmra.mrb[16].mxu0 %v1543_v2  ;;  %v1375_v14 = vmax.f32 %v1225_v3, 0.0 }
 0x28f   : > { %v1231_v13 = vadd.f32 %v1230_v11, %v4510_v53  ;;  %v1376_v17 = vmax.f32 %v1227_v9, 0.0 }
 0x290   : > { %v1379_v15 = vmax.f32 %v1229_v12, 0.0 }
 0x291   : > { %v1380_v24 = vmax.f32 %v1231_v13, 0.0 }
 0x292   : > { %v1547_v25 = vpack.c.bf16 %v1379_v15, %v1375_v14 }
 0x293   : > { %v1548_v26 = vpack.c.bf16 %v1380_v24, %v1376_v17  ;;  %v1234_v27 = vpop.f32.mrb[88].mxu1 }
 0x294   : > { %v1235_v30 = vadd.f32 %v1234_v27, %v4507_v47  ;;  %v1236_v31 = vpop.f32.mrb[89].mxu1 }
 0x295   : > { %v1237_v16 = vadd.f32 %v1236_v31, %v4510_v53  ;;  %v1238_v7 = vpop.f32.mrb[90].mxu1  ;;  %2248 = vmatprep.mubr.bf16.mxu0 %v1548_v26 }
 0x296   : > { %v1239_v8 = vadd.f32 %v1238_v7, %v4507_v47  ;;  %v1240_v18 = vpop.f32.mrb[91].mxu1  ;;  %2249 = vmatmul.mubr.bf16.gmra.mrb[20].mxu0 %v1547_v25  ;;  %v1383_v21 = vmax.f32 %v1235_v30, 0.0 }
 0x297   : > { %v1241_v20 = vadd.f32 %v1240_v18, %v4510_v53  ;;  %v1384_v19 = vmax.f32 %v1237_v16, 0.0 }
 0x298   : > { %v1387_v34 = vmax.f32 %v1239_v8, 0.0 }
 0x299   : > { %v1388_v35 = vmax.f32 %v1241_v20, 0.0 }
 0x29a   : > { %v1551_v50 = vpack.c.bf16 %v1387_v34, %v1383_v21 }
 0x29b   : > { %v1552_v51 = vpack.c.bf16 %v1388_v35, %v1384_v19  ;;  %v1244_v4 = vpop.f32.mrb[92].mxu1 }
 0x29c   : > { %v1245_v5 = vadd.f32 %v1244_v4, %v4507_v47  ;;  %v1246_v22 = vpop.f32.mrb[93].mxu1 }
 0x29d   : > { %v1247_v23 = vadd.f32 %v1246_v22, %v4510_v53  ;;  %v1248_v32 = vpop.f32.mrb[94].mxu1  ;;  %2258 = vmatprep.mubr.bf16.mxu0 %v1552_v51 }
 0x29e   : > { %v1249_v33 = vadd.f32 %v1248_v32, %v4507_v47  ;;  %v1250_v37 = vpop.f32.mrb[95].mxu1  ;;  %2259 = vmatmul.mubr.bf16.gmra.mrb[24].mxu0 %v1551_v50  ;;  %v1391_v39 = vmax.f32 %v1245_v5, 0.0 }
 0x29f   : > { %v1251_v38 = vadd.f32 %v1250_v37, %v4510_v53  ;;  %v1392_v28 = vmax.f32 %v1247_v23, 0.0 }
 0x2a0   : > { %v1395_v40 = vmax.f32 %v1249_v33, 0.0 }
 0x2a1   : > { %v1396_v42 = vmax.f32 %v1251_v38, 0.0 }
 0x2a2   : > { %v1555_v44 = vpack.c.bf16 %v1395_v40, %v1391_v39 }
 0x2a3   : > { %v1556_v45 = vpack.c.bf16 %v1396_v42, %v1392_v28  ;;  %v1254_v29 = vpop.f32.mrb[96].mxu1 }
 0x2a4   : > { %v1255_v46 = vadd.f32 %v1254_v29, %v4507_v47  ;;  %v1256_v48 = vpop.f32.mrb[97].mxu1 }
 0x2a5   : > { %v1257_v49 = vadd.f32 %v1256_v48, %v4510_v53  ;;  %v1258_v55 = vpop.f32.mrb[98].mxu1  ;;  %2268 = vmatprep.mubr.bf16.mxu0 %v1556_v45 }
 0x2a6   : > { %v1259_v56 = vadd.f32 %v1258_v55, %v4507_v47  ;;  %v1260_v57 = vpop.f32.mrb[99].mxu1  ;;  %2269 = vmatmul.mubr.bf16.gmra.mrb[28].mxu0 %v1555_v44  ;;  %v1399_v62 = vmax.f32 %v1255_v46, 0.0 }
 0x2a7   : > { %v1261_v58 = vadd.f32 %v1260_v57, %v4510_v53  ;;  %v1400_v60 = vmax.f32 %v1257_v49, 0.0 }
 0x2a8   : > { %v1403_v59 = vmax.f32 %v1259_v56, 0.0 }
 0x2a9   : > { %v1404_v0 = vmax.f32 %v1261_v58, 0.0 }
 0x2aa   : > { %v1559_v61 = vpack.c.bf16 %v1403_v59, %v1399_v62 }
 0x2ab   : > { %v1560_v63 = vpack.c.bf16 %v1404_v0, %v1400_v60  ;;  %v1264_v1 = vpop.f32.mrb[100].mxu1 }
 0x2ac   : > { %v1265_v2 = vadd.f32 %v1264_v1, %v4507_v47  ;;  %v1266_v52 = vpop.f32.mrb[101].mxu1 }
 0x2ad   : > { %v1267_v36 = vadd.f32 %v1266_v52, %v4510_v53  ;;  %v1268_v3 = vpop.f32.mrb[102].mxu1  ;;  %2278 = vmatprep.mubr.bf16.mxu0 %v1560_v63 }
 0x2ae   : > { %v1269_v6 = vadd.f32 %v1268_v3, %v4507_v47  ;;  %v1270_v9 = vpop.f32.mrb[103].mxu1  ;;  %2279 = vmatmul.mubr.bf16.gmra.mrb[32].mxu0 %v1559_v61  ;;  %v1407_v12 = vmax.f32 %v1265_v2, 0.0 }
 0x2af   : > { %v1271_v10 = vadd.f32 %v1270_v9, %v4510_v53  ;;  %v1408_v13 = vmax.f32 %v1267_v36, 0.0 }
 0x2b0   : > { %v1411_v11 = vmax.f32 %v1269_v6, 0.0 }
 0x2b1   : > { %v1412_v14 = vmax.f32 %v1271_v10, 0.0 }
 0x2b2   : > { %v1563_v15 = vpack.c.bf16 %v1411_v11, %v1407_v12 }
 0x2b3   : > { %v1564_v17 = vpack.c.bf16 %v1412_v14, %v1408_v13  ;;  %v1274_v24 = vpop.f32.mrb[104].mxu1 }
 0x2b4   : > { %v1275_v25 = vadd.f32 %v1274_v24, %v4507_v47  ;;  %v1276_v26 = vpop.f32.mrb[105].mxu1 }
 0x2b5   : > { %v1277_v27 = vadd.f32 %v1276_v26, %v4510_v53  ;;  %v1278_v30 = vpop.f32.mrb[106].mxu1  ;;  %2288 = vmatprep.mubr.bf16.mxu0 %v1564_v17 }
 0x2b6   : > { %v1279_v31 = vadd.f32 %v1278_v30, %v4507_v47  ;;  %v1280_v16 = vpop.f32.mrb[107].mxu1  ;;  %2289 = vmatmul.mubr.bf16.gmra.mrb[36].mxu0 %v1563_v15  ;;  %v1415_v8 = vmax.f32 %v1275_v25, 0.0 }
 0x2b7   : > { %v1281_v7 = vadd.f32 %v1280_v16, %v4510_v53  ;;  %v1416_v20 = vmax.f32 %v1277_v27, 0.0 }
 0x2b8   : > { %v1419_v18 = vmax.f32 %v1279_v31, 0.0 }
 0x2b9   : > { %v1420_v21 = vmax.f32 %v1281_v7, 0.0 }
 0x2ba   : > { %v1567_v34 = vpack.c.bf16 %v1419_v18, %v1415_v8 }
 0x2bb   : > { %v1568_v19 = vpack.c.bf16 %v1420_v21, %v1416_v20  ;;  %v1284_v35 = vpop.f32.mrb[108].mxu1 }
 0x2bc   : > { %v1285_v50 = vadd.f32 %v1284_v35, %v4507_v47  ;;  %v1286_v51 = vpop.f32.mrb[109].mxu1 }
 0x2bd   : > { %v1287_v4 = vadd.f32 %v1286_v51, %v4510_v53  ;;  %v1288_v5 = vpop.f32.mrb[110].mxu1  ;;  %2298 = vmatprep.mubr.bf16.mxu0 %v1568_v19 }
 0x2be   : > { %v1289_v22 = vadd.f32 %v1288_v5, %v4507_v47  ;;  %v1290_v23 = vpop.f32.mrb[111].mxu1  ;;  %2299 = vmatmul.mubr.bf16.gmra.mrb[40].mxu0 %v1567_v34  ;;  %v1423_v33 = vmax.f32 %v1285_v50, 0.0 }
 0x2bf   : > { %v1291_v32 = vadd.f32 %v1290_v23, %v4510_v53  ;;  %v1424_v38 = vmax.f32 %v1287_v4, 0.0 }
 0x2c0   : > { %v1427_v37 = vmax.f32 %v1289_v22, 0.0 }
 0x2c1   : > { %v1428_v39 = vmax.f32 %v1291_v32, 0.0 }
 0x2c2   : > { %v1571_v40 = vpack.c.bf16 %v1427_v37, %v1423_v33 }
 0x2c3   : > { %v1572_v28 = vpack.c.bf16 %v1428_v39, %v1424_v38  ;;  %v1294_v42 = vpop.f32.mrb[112].mxu1  ;;  %v1461_v39 = vld [vmem:[#allocation2] sm:$0xff] }
 0x2c4   : > { %v1295_v44 = vadd.f32 %v1294_v42, %v4507_v47  ;;  %v1296_v45 = vpop.f32.mrb[113].mxu1  ;;  %v1463_v42 = vld [vmem:[#allocation2 + $0x10] sm:$0xff] }
 0x2c5   : > { %v1297_v29 = vadd.f32 %v1296_v45, %v4510_v53  ;;  %v1298_v46 = vpop.f32.mrb[114].mxu1  ;;  %2308 = vmatprep.mubr.bf16.mxu0 %v1572_v28 }
 0x2c6   : > { %v1299_v48 = vadd.f32 %v1298_v46, %v4507_v47  ;;  %v1300_v49 = vpop.f32.mrb[115].mxu1  ;;  %2309 = vmatmul.mubr.bf16.gmra.mrb[44].mxu0 %v1571_v40  ;;  %v1431_v56 = vmax.f32 %v1295_v44, 0.0  ;;  %v1462_v40 = vld [vmem:[#allocation2 + $0x8] sm:$0xff] }
 0x2c7   : > { %v1301_v55 = vadd.f32 %v1300_v49, %v4510_v53  ;;  %v1432_v58 = vmax.f32 %v1297_v29, 0.0  ;;  %v1464_v29 = vld [vmem:[#allocation2 + $0x18] sm:$0xff] }
 0x2c8   : > { %v1435_v57 = vmax.f32 %v1299_v48, 0.0 }
 0x2c9   : > { %v1436_v62 = vmax.f32 %v1301_v55, 0.0  ;;  %v1465_v55 = vld [vmem:[#allocation2 + $0x20] sm:$0xff] }
 0x2ca   : > { %v1575_v59 = vpack.c.bf16 %v1435_v57, %v1431_v56  ;;  %v1466_v56 = vld [vmem:[#allocation2 + $0x28] sm:$0xff] }
 0x2cb   : > { %v1576_v60 = vpack.c.bf16 %v1436_v62, %v1432_v58  ;;  %v1304_v0 = vpop.f32.mrb[116].mxu1  ;;  %v1467_v58 = vld [vmem:[#allocation2 + $0x30] sm:$0xff] }
 0x2cc   : > { %v1305_v61 = vadd.f32 %v1304_v0, %v4507_v47  ;;  %v1306_v63 = vpop.f32.mrb[117].mxu1 }
 0x2cd   : > { %v1307_v1 = vadd.f32 %v1306_v63, %v4510_v53  ;;  %v1308_v2 = vpop.f32.mrb[118].mxu1  ;;  %2318 = vmatprep.mubr.bf16.mxu0 %v1576_v60  ;;  %v1468_v60 = vld [vmem:[#allocation2 + $0x38] sm:$0xff] }
 0x2ce   : > { %v1309_v52 = vadd.f32 %v1308_v2, %v4507_v47  ;;  %v1310_v36 = vpop.f32.mrb[119].mxu1  ;;  %2319 = vmatmul.mubr.bf16.gmra.mrb[48].mxu0 %v1575_v59  ;;  %v1439_v6 = vmax.f32 %v1305_v61, 0.0 }
 0x2cf   : > { %v1311_v3 = vadd.f32 %v1310_v36, %v4510_v53  ;;  %v1440_v10 = vmax.f32 %v1307_v1, 0.0  ;;  %v1470_v36 = vld [vmem:[#allocation2 + $0x48] sm:$0xff] }
 0x2d0   : > { %v1443_v9 = vmax.f32 %v1309_v52, 0.0  ;;  %v1469_v52 = vld [vmem:[#allocation2 + $0x40] sm:$0xff] }
 0x2d1   : > { %v1444_v12 = vmax.f32 %v1311_v3, 0.0 }
 0x2d2   : > { %v1579_v11 = vpack.c.bf16 %v1443_v9, %v1439_v6  ;;  %v1471_v6 = vld [vmem:[#allocation2 + $0x50] sm:$0xff] }
 0x2d3   : > { %v1580_v13 = vpack.c.bf16 %v1444_v12, %v1440_v10  ;;  %v1314_v14 = vpop.f32.mrb[120].mxu1  ;;  %v1472_v12 = vld [vmem:[#allocation2 + $0x58] sm:$0xff] }
 0x2d4   : > { %v1315_v15 = vadd.f32 %v1314_v14, %v4507_v47  ;;  %v1316_v17 = vpop.f32.mrb[121].mxu1 }
 0x2d5   : > { %v1317_v24 = vadd.f32 %v1316_v17, %v4510_v53  ;;  %v1318_v25 = vpop.f32.mrb[122].mxu1  ;;  %2328 = vmatprep.mubr.bf16.mxu0 %v1580_v13 }
 0x2d6   : > { %v1319_v26 = vadd.f32 %v1318_v25, %v4507_v47  ;;  %v1320_v27 = vpop.f32.mrb[123].mxu1  ;;  %2329 = vmatmul.mubr.bf16.gmra.mrb[52].mxu0 %v1579_v11  ;;  %v1447_v31 = vmax.f32 %v1315_v15, 0.0  ;;  %v1474_v25 = vld [vmem:[#allocation2 + $0x68] sm:$0xff] }
 0x2d7   : > { %v1321_v30 = vadd.f32 %v1320_v27, %v4510_v53  ;;  %v1448_v7 = vmax.f32 %v1317_v24, 0.0  ;;  %v1473_v24 = vld [vmem:[#allocation2 + $0x60] sm:$0xff]  ;;  %v1475_v27 = vld [vmem:[#allocation2 + $0x70] sm:$0xff] }
 0x2d8   : > { %v1451_v16 = vmax.f32 %v1319_v26, 0.0 }
 0x2d9   : > { %v1452_v8 = vmax.f32 %v1321_v30, 0.0 }
 0x2da   : > { %v1583_v18 = vpack.c.bf16 %v1451_v16, %v1447_v31  ;;  %v1476_v16 = vld [vmem:[#allocation2 + $0x78] sm:$0xff] }
 0x2db   : > { %v1584_v20 = vpack.c.bf16 %v1452_v8, %v1448_v7  ;;  %v1324_v21 = vpop.f32.mrb[124].mxu1 }
 0x2dc   : > { %v1325_v34 = vadd.f32 %v1324_v21, %v4507_v47  ;;  %v1326_v19 = vpop.f32.mrb[125].mxu1 }
 0x2dd   : > { %v1327_v35 = vadd.f32 %v1326_v19, %v4510_v53  ;;  %v1328_v50 = vpop.f32.mrb[126].mxu1  ;;  %2338 = vmatprep.mubr.bf16.mxu0 %v1584_v20  ;;  %v1478_v19 = vld [vmem:[#allocation2 + $0x88] sm:$0xff] }
 0x2de   : > { %v1329_v51 = vadd.f32 %v1328_v50, %v4507_v47  ;;  %v1330_v4 = vpop.f32.mrb[127].mxu1  ;;  %2339 = vmatmul.mubr.bf16.gmra.mrb[56].mxu0 %v1583_v18  ;;  %v1455_v22 = vmax.f32 %v1325_v34, 0.0  ;;  %v1477_v34 = vld [vmem:[#allocation2 + $0x80] sm:$0xff]  ;;  %v1479_v50 = vld [vmem:[#allocation2 + $0x90] sm:$0xff] }
 0x2df   : > { %v1331_v5 = vadd.f32 %v1330_v4, %v4510_v53  ;;  %v1456_v32 = vmax.f32 %v1327_v35, 0.0 }
 0x2e0   : > { %v1459_v23 = vmax.f32 %v1329_v51, 0.0 }
 0x2e1   : > { %v1460_v33 = vmax.f32 %v1331_v5, 0.0  ;;  %v1480_v5 = vld [vmem:[#allocation2 + $0x98] sm:$0xff] }
 0x2e2   : > { %v1587_v37 = vpack.c.bf16 %v1459_v23, %v1455_v22 }
 0x2e3   : > { %v1588_v38 = vpack.c.bf16 %v1460_v33, %v1456_v32 }
 0x2e5   : > { %2348 = vmatprep.mubr.bf16.mxu0 %v1588_v38  ;;  %v1481_v38 = vld [vmem:[#allocation2 + $0xa0] sm:$0xff] }
 0x2e6   : > { %2349 = vmatmul.mubr.bf16.gmra.mrb[60].mxu0 %v1587_v37 }
 0x341   : > { %v2200_v28 = vpop.f32.mrb[0].mxu0 }
 0x342   : > { %v2359_v44 = vadd.f32 %v2200_v28, %v1461_v39  ;;  %v2202_v45 = vpop.f32.mrb[1].mxu0  ;;  %v1482_v39 = vld [vmem:[#allocation2 + $0xa8] sm:$0xff]  ;;  %v1483_v28 = vld [vmem:[#allocation2 + $0xb0] sm:$0xff] }
 0x343   : > { %v2360_v47 = vadd.f32 %v2202_v45, %v1462_v40  ;;  %v2204_v46 = vpop.f32.mrb[2].mxu0  ;;  %v1484_v45 = vld [vmem:[#allocation2 + $0xb8] sm:$0xff] }
 0x344   : > { %2423 = vst [vmem:[#allocation2] sm:$0xff] %v2359_v44  ;;  %v2361_v48 = vadd.f32 %v2204_v46, %v1463_v42  ;;  %v2206_v53 = vpop.f32.mrb[3].mxu0 }
 0x345   : > { %2424 = vst [vmem:[#allocation2 + $0x8] sm:$0xff] %v2360_v47  ;;  %v2362_v49 = vadd.f32 %v2206_v53, %v1464_v29 }
 0x346   : > { %2425 = vst [vmem:[#allocation2 + $0x10] sm:$0xff] %v2361_v48 }
 0x347   : > { %2426 = vst [vmem:[#allocation2 + $0x18] sm:$0xff] %v2362_v49  ;;  %v1485_v49 = vld [vmem:[#allocation2 + $0xc0] sm:$0xff] }
 0x349   : > { %v2210_v57 = vpop.f32.mrb[4].mxu0 }
 0x34a   : > { %v2363_v62 = vadd.f32 %v2210_v57, %v1465_v55  ;;  %v2212_v59 = vpop.f32.mrb[5].mxu0  ;;  %v1486_v55 = vld [vmem:[#allocation2 + $0xc8] sm:$0xff]  ;;  %v1487_v57 = vld [vmem:[#allocation2 + $0xd0] sm:$0xff] }
 0x34b   : > { %v2364_v0 = vadd.f32 %v2212_v59, %v1466_v56  ;;  %v2214_v61 = vpop.f32.mrb[6].mxu0  ;;  %v1488_v59 = vld [vmem:[#allocation2 + $0xd8] sm:$0xff] }
 0x34c   : > { %2427 = vst [vmem:[#allocation2 + $0x20] sm:$0xff] %v2363_v62  ;;  %v2365_v63 = vadd.f32 %v2214_v61, %v1467_v58  ;;  %v2216_v1 = vpop.f32.mrb[7].mxu0 }
 0x34d   : > { %2428 = vst [vmem:[#allocation2 + $0x28] sm:$0xff] %v2364_v0  ;;  %v2366_v2 = vadd.f32 %v2216_v1, %v1468_v60 }
 0x34e   : > { %2429 = vst [vmem:[#allocation2 + $0x30] sm:$0xff] %v2365_v63 }
 0x34f   : > { %2430 = vst [vmem:[#allocation2 + $0x38] sm:$0xff] %v2366_v2  ;;  %v1489_v2 = vld [vmem:[#allocation2 + $0xe0] sm:$0xff] }
 0x351   : > { %v2220_v3 = vpop.f32.mrb[8].mxu0 }
 0x352   : > { %v2367_v9 = vadd.f32 %v2220_v3, %v1469_v52  ;;  %v2222_v10 = vpop.f32.mrb[9].mxu0  ;;  %v1490_v52 = vld [vmem:[#allocation2 + $0xe8] sm:$0xff]  ;;  %v1491_v3 = vld [vmem:[#allocation2 + $0xf0] sm:$0xff] }
 0x353   : > { %v2368_v11 = vadd.f32 %v2222_v10, %v1470_v36  ;;  %v2224_v13 = vpop.f32.mrb[10].mxu0  ;;  %v1492_v10 = vld [vmem:[#allocation2 + $0xf8] sm:$0xff] }
 0x354   : > { %2431 = vst [vmem:[#allocation2 + $0x40] sm:$0xff] %v2367_v9  ;;  %v2369_v14 = vadd.f32 %v2224_v13, %v1471_v6  ;;  %v2226_v15 = vpop.f32.mrb[11].mxu0 }
 0x355   : > { %2432 = vst [vmem:[#allocation2 + $0x48] sm:$0xff] %v2368_v11  ;;  %v2370_v17 = vadd.f32 %v2226_v15, %v1472_v12 }
 0x356   : > { %2433 = vst [vmem:[#allocation2 + $0x50] sm:$0xff] %v2369_v14 }
 0x357   : > { %2434 = vst [vmem:[#allocation2 + $0x58] sm:$0xff] %v2370_v17  ;;  %v1493_v17 = vld [vmem:[#allocation2 + $0x100] sm:$0xff] }
 0x359   : > { %v2230_v26 = vpop.f32.mrb[12].mxu0 }
 0x35a   : > { %v2371_v30 = vadd.f32 %v2230_v26, %v1473_v24  ;;  %v2232_v31 = vpop.f32.mrb[13].mxu0  ;;  %v1494_v24 = vld [vmem:[#allocation2 + $0x108] sm:$0xff]  ;;  %v1495_v26 = vld [vmem:[#allocation2 + $0x110] sm:$0xff] }
 0x35b   : > { %v2372_v7 = vadd.f32 %v2232_v31, %v1474_v25  ;;  %v2234_v8 = vpop.f32.mrb[14].mxu0  ;;  %v1496_v31 = vld [vmem:[#allocation2 + $0x118] sm:$0xff] }
 0x35c   : > { %2435 = vst [vmem:[#allocation2 + $0x60] sm:$0xff] %v2371_v30  ;;  %v2373_v18 = vadd.f32 %v2234_v8, %v1475_v27  ;;  %v2236_v20 = vpop.f32.mrb[15].mxu0 }
 0x35d   : > { %2436 = vst [vmem:[#allocation2 + $0x68] sm:$0xff] %v2372_v7  ;;  %v2374_v21 = vadd.f32 %v2236_v20, %v1476_v16 }
 0x35e   : > { %2437 = vst [vmem:[#allocation2 + $0x70] sm:$0xff] %v2373_v18 }
 0x35f   : > { %2438 = vst [vmem:[#allocation2 + $0x78] sm:$0xff] %v2374_v21  ;;  %v1497_v21 = vld [vmem:[#allocation2 + $0x120] sm:$0xff] }
 0x361   : > { %v2240_v35 = vpop.f32.mrb[16].mxu0 }
 0x362   : > { %v2375_v51 = vadd.f32 %v2240_v35, %v1477_v34  ;;  %v2242_v4 = vpop.f32.mrb[17].mxu0  ;;  %v1498_v34 = vld [vmem:[#allocation2 + $0x128] sm:$0xff]  ;;  %v1499_v35 = vld [vmem:[#allocation2 + $0x130] sm:$0xff] }
 0x363   : > { %v2376_v22 = vadd.f32 %v2242_v4, %v1478_v19  ;;  %v2244_v23 = vpop.f32.mrb[18].mxu0  ;;  %v1500_v4 = vld [vmem:[#allocation2 + $0x138] sm:$0xff] }
 0x364   : > { %2439 = vst [vmem:[#allocation2 + $0x80] sm:$0xff] %v2375_v51  ;;  %v2377_v32 = vadd.f32 %v2244_v23, %v1479_v50  ;;  %v2246_v33 = vpop.f32.mrb[19].mxu0 }
 0x365   : > { %2440 = vst [vmem:[#allocation2 + $0x88] sm:$0xff] %v2376_v22  ;;  %v2378_v37 = vadd.f32 %v2246_v33, %v1480_v5 }
 0x366   : > { %2441 = vst [vmem:[#allocation2 + $0x90] sm:$0xff] %v2377_v32 }
 0x367   : > { %2442 = vst [vmem:[#allocation2 + $0x98] sm:$0xff] %v2378_v37  ;;  %v1501_v37 = vld [vmem:[#allocation2 + $0x140] sm:$0xff] }
 0x369   : > { %v2250_v40 = vpop.f32.mrb[20].mxu0 }
 0x36a   : > { %v2379_v42 = vadd.f32 %v2250_v40, %v1481_v38  ;;  %v2252_v44 = vpop.f32.mrb[21].mxu0  ;;  %v1502_v38 = vld [vmem:[#allocation2 + $0x148] sm:$0xff]  ;;  %v1503_v40 = vld [vmem:[#allocation2 + $0x150] sm:$0xff] }
 0x36b   : > { %v2380_v29 = vadd.f32 %v2252_v44, %v1482_v39  ;;  %v2254_v47 = vpop.f32.mrb[22].mxu0  ;;  %v1504_v44 = vld [vmem:[#allocation2 + $0x158] sm:$0xff] }
 0x36c   : > { %2443 = vst [vmem:[#allocation2 + $0xa0] sm:$0xff] %v2379_v42  ;;  %v2381_v46 = vadd.f32 %v2254_v47, %v1483_v28  ;;  %v2256_v48 = vpop.f32.mrb[23].mxu0 }
 0x36d   : > { %2444 = vst [vmem:[#allocation2 + $0xa8] sm:$0xff] %v2380_v29  ;;  %v2382_v53 = vadd.f32 %v2256_v48, %v1484_v45 }
 0x36e   : > { %2445 = vst [vmem:[#allocation2 + $0xb0] sm:$0xff] %v2381_v46 }
 0x36f   : > { %2446 = vst [vmem:[#allocation2 + $0xb8] sm:$0xff] %v2382_v53  ;;  %v1505_v53 = vld [vmem:[#allocation2 + $0x160] sm:$0xff] }
 0x371   : > { %v2260_v56 = vpop.f32.mrb[24].mxu0 }
 0x372   : > { %v2383_v58 = vadd.f32 %v2260_v56, %v1485_v49  ;;  %v2262_v62 = vpop.f32.mrb[25].mxu0  ;;  %v1506_v49 = vld [vmem:[#allocation2 + $0x168] sm:$0xff]  ;;  %v1507_v56 = vld [vmem:[#allocation2 + $0x170] sm:$0xff] }
 0x373   : > { %v2384_v60 = vadd.f32 %v2262_v62, %v1486_v55  ;;  %v2264_v0 = vpop.f32.mrb[26].mxu0  ;;  %v1508_v62 = vld [vmem:[#allocation2 + $0x178] sm:$0xff] }
 0x374   : > { %2447 = vst [vmem:[#allocation2 + $0xc0] sm:$0xff] %v2383_v58  ;;  %v2385_v61 = vadd.f32 %v2264_v0, %v1487_v57  ;;  %v2266_v63 = vpop.f32.mrb[27].mxu0 }
 0x375   : > { %2448 = vst [vmem:[#allocation2 + $0xc8] sm:$0xff] %v2384_v60  ;;  %v2386_v1 = vadd.f32 %v2266_v63, %v1488_v59 }
 0x376   : > { %2449 = vst [vmem:[#allocation2 + $0xd0] sm:$0xff] %v2385_v61 }
 0x377   : > { %2450 = vst [vmem:[#allocation2 + $0xd8] sm:$0xff] %v2386_v1  ;;  %v1509_v1 = vld [vmem:[#allocation2 + $0x180] sm:$0xff] }
 0x379   : > { %v2270_v36 = vpop.f32.mrb[28].mxu0 }
 0x37a   : > { %v2387_v6 = vadd.f32 %v2270_v36, %v1489_v2  ;;  %v2272_v9 = vpop.f32.mrb[29].mxu0  ;;  %v1510_v2 = vld [vmem:[#allocation2 + $0x188] sm:$0xff]  ;;  %v1511_v36 = vld [vmem:[#allocation2 + $0x190] sm:$0xff] }
 0x37b   : > { %v2388_v12 = vadd.f32 %v2272_v9, %v1490_v52  ;;  %v2274_v11 = vpop.f32.mrb[30].mxu0  ;;  %v1512_v9 = vld [vmem:[#allocation2 + $0x198] sm:$0xff] }
 0x37c   : > { %2451 = vst [vmem:[#allocation2 + $0xe0] sm:$0xff] %v2387_v6  ;;  %v2389_v13 = vadd.f32 %v2274_v11, %v1491_v3  ;;  %v2276_v14 = vpop.f32.mrb[31].mxu0 }
 0x37d   : > { %2452 = vst [vmem:[#allocation2 + $0xe8] sm:$0xff] %v2388_v12  ;;  %v2390_v15 = vadd.f32 %v2276_v14, %v1492_v10 }
 0x37e   : > { %2453 = vst [vmem:[#allocation2 + $0xf0] sm:$0xff] %v2389_v13 }
 0x37f   : > { %2454 = vst [vmem:[#allocation2 + $0xf8] sm:$0xff] %v2390_v15  ;;  %v1513_v15 = vld [vmem:[#allocation2 + $0x1a0] sm:$0xff] }
 0x381   : > { %v2280_v25 = vpop.f32.mrb[32].mxu0 }
 0x382   : > { %v2391_v27 = vadd.f32 %v2280_v25, %v1493_v17  ;;  %v2282_v30 = vpop.f32.mrb[33].mxu0  ;;  %v1514_v17 = vld [vmem:[#allocation2 + $0x1a8] sm:$0xff]  ;;  %v1515_v25 = vld [vmem:[#allocation2 + $0x1b0] sm:$0xff] }
 0x383   : > { %v2392_v16 = vadd.f32 %v2282_v30, %v1494_v24  ;;  %v2284_v7 = vpop.f32.mrb[34].mxu0  ;;  %v1516_v30 = vld [vmem:[#allocation2 + $0x1b8] sm:$0xff] }
 0x384   : > { %2455 = vst [vmem:[#allocation2 + $0x100] sm:$0xff] %v2391_v27  ;;  %v2393_v8 = vadd.f32 %v2284_v7, %v1495_v26  ;;  %v2286_v18 = vpop.f32.mrb[35].mxu0 }
 0x385   : > { %2456 = vst [vmem:[#allocation2 + $0x108] sm:$0xff] %v2392_v16  ;;  %v2394_v20 = vadd.f32 %v2286_v18, %v1496_v31 }
 0x386   : > { %2457 = vst [vmem:[#allocation2 + $0x110] sm:$0xff] %v2393_v8 }
 0x387   : > { %2458 = vst [vmem:[#allocation2 + $0x118] sm:$0xff] %v2394_v20  ;;  %v1517_v20 = vld [vmem:[#allocation2 + $0x1c0] sm:$0xff] }
 0x389   : > { %v2290_v19 = vpop.f32.mrb[36].mxu0 }
 0x38a   : > { %v2395_v50 = vadd.f32 %v2290_v19, %v1497_v21  ;;  %v2292_v51 = vpop.f32.mrb[37].mxu0  ;;  %v1518_v21 = vld [vmem:[#allocation2 + $0x1c8] sm:$0xff]  ;;  %v1519_v19 = vld [vmem:[#allocation2 + $0x1d0] sm:$0xff] }
 0x38b   : > { %v2396_v5 = vadd.f32 %v2292_v51, %v1498_v34  ;;  %v2294_v22 = vpop.f32.mrb[38].mxu0  ;;  %v1520_v51 = vld [vmem:[#allocation2 + $0x1d8] sm:$0xff] }
 0x38c   : > { %2459 = vst [vmem:[#allocation2 + $0x120] sm:$0xff] %v2395_v50  ;;  %v2397_v23 = vadd.f32 %v2294_v22, %v1499_v35  ;;  %v2296_v32 = vpop.f32.mrb[39].mxu0 }
 0x38d   : > { %2460 = vst [vmem:[#allocation2 + $0x128] sm:$0xff] %v2396_v5  ;;  %v2398_v33 = vadd.f32 %v2296_v32, %v1500_v4 }
 0x38e   : > { %2461 = vst [vmem:[#allocation2 + $0x130] sm:$0xff] %v2397_v23 }
 0x38f   : > { %2462 = vst [vmem:[#allocation2 + $0x138] sm:$0xff] %v2398_v33  ;;  %v1521_v33 = vld [vmem:[#allocation2 + $0x1e0] sm:$0xff] }
 0x391   : > { %v2300_v39 = vpop.f32.mrb[40].mxu0 }
 0x392   : > { %v2399_v28 = vadd.f32 %v2300_v39, %v1501_v37  ;;  %v2302_v42 = vpop.f32.mrb[41].mxu0  ;;  %v1522_v37 = vld [vmem:[#allocation2 + $0x1e8] sm:$0xff]  ;;  %v1523_v39 = vld [vmem:[#allocation2 + $0x1f0] sm:$0xff] }
 0x393   : > { %v2400_v45 = vadd.f32 %v2302_v42, %v1502_v38  ;;  %v2304_v29 = vpop.f32.mrb[42].mxu0  ;;  %v1524_v42 = vld [vmem:[#allocation2 + $0x1f8] sm:$0xff] }
 0x394   : > { %2463 = vst [vmem:[#allocation2 + $0x140] sm:$0xff] %v2399_v28  ;;  %v2401_v47 = vadd.f32 %v2304_v29, %v1503_v40  ;;  %v2306_v46 = vpop.f32.mrb[43].mxu0 }
 0x395   : > { %2464 = vst [vmem:[#allocation2 + $0x148] sm:$0xff] %v2400_v45  ;;  %v2402_v48 = vadd.f32 %v2306_v46, %v1504_v44 }
 0x396   : > { %2465 = vst [vmem:[#allocation2 + $0x150] sm:$0xff] %v2401_v47 }
 0x397   : > { %2466 = vst [vmem:[#allocation2 + $0x158] sm:$0xff] %v2402_v48  ;;  %v2491_v48 = vld [vmem:[#allocation2] sm:$0xff] (!%p3013_p4) }
 0x399   : > { %v2310_v55 = vpop.f32.mrb[44].mxu0 }
 0x39a   : > { %v2403_v57 = vadd.f32 %v2310_v55, %v1505_v53  ;;  %v2312_v58 = vpop.f32.mrb[45].mxu0  ;;  %v2555_v53 = vld [vmem:[%s4845_s23] sm:$0x3] (!%p3013_p4) }
 0x39b   : > { %v2404_v59 = vadd.f32 %v2312_v58, %v1506_v49  ;;  %v2314_v60 = vpop.f32.mrb[46].mxu0  ;;  %v2492_v49 = vld [vmem:[#allocation2 + $0x8] sm:$0xff] (!%p3013_p4)  ;;  %v4582_v55 = vrot.slane (!%p3013_p4), %v2555_v53, %v609_v43  ;;  %v2494_v58 = vld [vmem:[#allocation2 + $0x18] sm:$0xff] (!%p3013_p4) }
 0x39c   : > { %2467 = vst [vmem:[#allocation2 + $0x160] sm:$0xff] %v2403_v57  ;;  %v2405_v0 = vadd.f32 %v2314_v60, %v1507_v56  ;;  %v2316_v61 = vpop.f32.mrb[47].mxu0  ;;  %v4586_v56 = vrot.slane (!%p3013_p4), %v2555_v53, %v613_v54  ;;  %v2493_v57 = vld [vmem:[#allocation2 + $0x10] sm:$0xff] (!%p3013_p4)  ;;  %v2499_v54 = vld [vmem:[#allocation2 + $0x40] sm:$0xff] (!%p3013_p4) }
 0x39d   : > { %2468 = vst [vmem:[#allocation2 + $0x168] sm:$0xff] %v2404_v59  ;;  %v2406_v63 = vadd.f32 %v2316_v61, %v1508_v62  ;;  %v2495_v62 = vld [vmem:[#allocation2 + $0x20] sm:$0xff] (!%p3013_p4)  ;;  %v2496_v59 = vld [vmem:[#allocation2 + $0x28] sm:$0xff] (!%p3013_p4)  ;;  %v2497_v60 = vld [vmem:[#allocation2 + $0x30] sm:$0xff] (!%p3013_p4)  ;;  %v2567_v61 = vadd.f32 (!%p3013_p4), %v4582_v55, %v2491_v48  ;;  %v2569_v43 = vadd.f32 (!%p3013_p4), %v4582_v55, %v2493_v57 }
 0x39e   : > { %2469 = vst [vmem:[#allocation2 + $0x170] sm:$0xff] %v2405_v0  ;;  %v2498_v0 = vld [vmem:[#allocation2 + $0x38] sm:$0xff] (!%p3013_p4)  ;;  %v2570_v41 = vadd.f32 (!%p3013_p4), %v4586_v56, %v2494_v58  ;;  %v2523_v57 = vld [vmem:[#allocation2 + $0x100] sm:$0xff] (!%p3013_p4)  ;;  %v2524_v58 = vld [vmem:[#allocation2 + $0x108] sm:$0xff] (!%p3013_p4) }
 0x39f   : > { %2470 = vst [vmem:[#allocation2 + $0x178] sm:$0xff] %v2406_v63  ;;  %v2568_v63 = vadd.f32 (!%p3013_p4), %v4586_v56, %v2492_v49  ;;  %2631 = vst [vmem:[%s4036_s8] sm:$0xff] (!%p3013_p4), %v2567_v61  ;;  %v2526_v61 = vld [vmem:[#allocation2 + $0x118] sm:$0xff] (!%p3013_p4) }
 0x3a0   : > { %2633 = vst [vmem:[%s4036_s8 + $0x10] sm:$0xff] (!%p3013_p4), %v2569_v43  ;;  %2634 = vst [vmem:[%s4036_s8 + $0x18] sm:$0xff] (!%p3013_p4), %v2570_v41  ;;  %v2528_v43 = vld [vmem:[#allocation2 + $0x128] sm:$0xff] (!%p3013_p4)  ;;  %v2602_v41 = vadd.f32 (!%p3013_p4), %v4586_v56, %v2526_v61 }
 0x3a1   : > { %v2320_v52 = vpop.f32.mrb[48].mxu0  ;;  %2632 = vst [vmem:[%s4036_s8 + $0x8] sm:$0xff] (!%p3013_p4), %v2568_v63  ;;  %v2527_v63 = vld [vmem:[#allocation2 + $0x120] sm:$0xff] (!%p3013_p4) }
 0x3a2   : > { %v2407_v3 = vadd.f32 %v2320_v52, %v1509_v1  ;;  %v2322_v6 = vpop.f32.mrb[49].mxu0  ;;  %v2500_v1 = vld [vmem:[#allocation2 + $0x48] sm:$0xff] (!%p3013_p4)  ;;  %v2571_v52 = vadd.f32 (!%p3013_p4), %v4582_v55, %v2495_v62  ;;  %v2525_v62 = vld [vmem:[#allocation2 + $0x110] sm:$0xff] (!%p3013_p4)  ;;  %2666 = vst [vmem:[%s4036_s8 + $0x118] sm:$0xff] (!%p3013_p4), %v2602_v41 }
 0x3a3   : > { %v2408_v10 = vadd.f32 %v2322_v6, %v1510_v2  ;;  %v2324_v12 = vpop.f32.mrb[50].mxu0  ;;  %v2501_v2 = vld [vmem:[#allocation2 + $0x50] sm:$0xff] (!%p3013_p4)  ;;  %v2574_v6 = vadd.f32 (!%p3013_p4), %v4586_v56, %v2498_v0  ;;  %v2601_v0 = vadd.f32 (!%p3013_p4), %v4582_v55, %v2525_v62 }
 0x3a4   : > { %2471 = vst [vmem:[#allocation2 + $0x180] sm:$0xff] %v2407_v3  ;;  %v2409_v11 = vadd.f32 %v2324_v12, %v1511_v36  ;;  %v2326_v13 = vpop.f32.mrb[51].mxu0  ;;  %v2572_v36 = vadd.f32 (!%p3013_p4), %v4586_v56, %v2496_v59  ;;  %v2573_v3 = vadd.f32 (!%p3013_p4), %v4582_v55, %v2497_v60  ;;  %v2504_v12 = vld [vmem:[#allocation2 + $0x68] sm:$0xff] (!%p3013_p4)  ;;  %2635 = vst [vmem:[%s4036_s8 + $0x20] sm:$0xff] (!%p3013_p4), %v2571_v52  ;;  %v2530_v52 = vld [vmem:[#allocation2 + $0x138] sm:$0xff] (!%p3013_p4) }
 0x3a5   : > { %2472 = vst [vmem:[#allocation2 + $0x188] sm:$0xff] %v2408_v10  ;;  %v2410_v14 = vadd.f32 %v2326_v13, %v1512_v9  ;;  %v2502_v9 = vld [vmem:[#allocation2 + $0x58] sm:$0xff] (!%p3013_p4)  ;;  %v2503_v10 = vld [vmem:[#allocation2 + $0x60] sm:$0xff] (!%p3013_p4)  ;;  %v2576_v13 = vadd.f32 (!%p3013_p4), %v4586_v56, %v2500_v1  ;;  %2638 = vst [vmem:[%s4036_s8 + $0x38] sm:$0xff] (!%p3013_p4), %v2574_v6  ;;  %v2599_v59 = vadd.f32 (!%p3013_p4), %v4582_v55, %v2523_v57 }
 0x3a6   : > { %2473 = vst [vmem:[#allocation2 + $0x190] sm:$0xff] %v2409_v11  ;;  %v2575_v11 = vadd.f32 (!%p3013_p4), %v4582_v55, %v2499_v54  ;;  %2636 = vst [vmem:[%s4036_s8 + $0x28] sm:$0xff] (!%p3013_p4), %v2572_v36  ;;  %v2600_v60 = vadd.f32 (!%p3013_p4), %v4586_v56, %v2524_v58  ;;  %v2603_v54 = vadd.f32 (!%p3013_p4), %v4582_v55, %v2527_v63  ;;  %v2531_v36 = vld [vmem:[#allocation2 + $0x140] sm:$0xff] (!%p3013_p4) }
 0x3a7   : > { %2474 = vst [vmem:[#allocation2 + $0x198] sm:$0xff] %v2410_v14  ;;  %v2577_v14 = vadd.f32 (!%p3013_p4), %v4582_v55, %v2501_v2  ;;  %2637 = vst [vmem:[%s4036_s8 + $0x30] sm:$0xff] (!%p3013_p4), %v2573_v3  ;;  %v2604_v1 = vadd.f32 (!%p3013_p4), %v4586_v56, %v2528_v43  ;;  %v2529_v2 = vld [vmem:[#allocation2 + $0x130] sm:$0xff] (!%p3013_p4)  ;;  %v2606_v6 = vadd.f32 (!%p3013_p4), %v4586_v56, %v2530_v52 }
 0x3a8   : > { %2639 = vst [vmem:[%s4036_s8 + $0x40] sm:$0xff] (!%p3013_p4), %v2575_v11  ;;  %2640 = vst [vmem:[%s4036_s8 + $0x48] sm:$0xff] (!%p3013_p4), %v2576_v13  ;;  %v2605_v3 = vadd.f32 (!%p3013_p4), %v4582_v55, %v2529_v2  ;;  %v2534_v11 = vld [vmem:[#allocation2 + $0x158] sm:$0xff] (!%p3013_p4) }
 0x3a9   : > { %v2330_v24 = vpop.f32.mrb[52].mxu0  ;;  %2641 = vst [vmem:[%s4036_s8 + $0x50] sm:$0xff] (!%p3013_p4), %v2577_v14  ;;  %2663 = vst [vmem:[%s4036_s8 + $0x100] sm:$0xff] (!%p3013_p4), %v2599_v59 }
 0x3aa   : > { %v2411_v26 = vadd.f32 %v2330_v24, %v1513_v15  ;;  %v2332_v27 = vpop.f32.mrb[53].mxu0  ;;  %v2578_v15 = vadd.f32 (!%p3013_p4), %v4586_v56, %v2502_v9  ;;  %v2506_v24 = vld [vmem:[#allocation2 + $0x78] sm:$0xff] (!%p3013_p4)  ;;  %2664 = vst [vmem:[%s4036_s8 + $0x108] sm:$0xff] (!%p3013_p4), %v2600_v60  ;;  %2665 = vst [vmem:[%s4036_s8 + $0x110] sm:$0xff] (!%p3013_p4), %v2601_v0  ;;  %v2607_v9 = vadd.f32 (!%p3013_p4), %v4582_v55, %v2531_v36 }
 0x3ab   : > { %v2412_v31 = vadd.f32 %v2332_v27, %v1514_v17  ;;  %v2334_v16 = vpop.f32.mrb[54].mxu0  ;;  %v2505_v17 = vld [vmem:[#allocation2 + $0x70] sm:$0xff] (!%p3013_p4)  ;;  %v2580_v27 = vadd.f32 (!%p3013_p4), %v4586_v56, %v2504_v12  ;;  %2667 = vst [vmem:[%s4036_s8 + $0x120] sm:$0xff] (!%p3013_p4), %v2603_v54  ;;  %2668 = vst [vmem:[%s4036_s8 + $0x128] sm:$0xff] (!%p3013_p4), %v2604_v1 }
 0x3ac   : > { %2475 = vst [vmem:[#allocation2 + $0x1a0] sm:$0xff] %v2411_v26  ;;  %v2413_v7 = vadd.f32 %v2334_v16, %v1515_v25  ;;  %v2336_v8 = vpop.f32.mrb[55].mxu0  ;;  %v2507_v25 = vld [vmem:[#allocation2 + $0x80] sm:$0xff] (!%p3013_p4)  ;;  %v2579_v26 = vadd.f32 (!%p3013_p4), %v4582_v55, %v2503_v10  ;;  %v2508_v16 = vld [vmem:[#allocation2 + $0x88] sm:$0xff] (!%p3013_p4)  ;;  %2642 = vst [vmem:[%s4036_s8 + $0x58] sm:$0xff] (!%p3013_p4), %v2578_v15  ;;  %v2610_v15 = vadd.f32 (!%p3013_p4), %v4586_v56, %v2534_v11 }
 0x3ad   : > { %2476 = vst [vmem:[#allocation2 + $0x1a8] sm:$0xff] %v2412_v31  ;;  %v2414_v18 = vadd.f32 %v2336_v8, %v1516_v30  ;;  %v2581_v30 = vadd.f32 (!%p3013_p4), %v4582_v55, %v2505_v17  ;;  %v2582_v31 = vadd.f32 (!%p3013_p4), %v4586_v56, %v2506_v24  ;;  %v2510_v8 = vld [vmem:[#allocation2 + $0x98] sm:$0xff] (!%p3013_p4)  ;;  %2644 = vst [vmem:[%s4036_s8 + $0x68] sm:$0xff] (!%p3013_p4), %v2580_v27  ;;  %v2532_v10 = vld [vmem:[#allocation2 + $0x148] sm:$0xff] (!%p3013_p4) }
 0x3ae   : > { %2477 = vst [vmem:[#allocation2 + $0x1b0] sm:$0xff] %v2413_v7  ;;  %v2509_v7 = vld [vmem:[#allocation2 + $0x90] sm:$0xff] (!%p3013_p4)  ;;  %2643 = vst [vmem:[%s4036_s8 + $0x60] sm:$0xff] (!%p3013_p4), %v2579_v26  ;;  %v2608_v13 = vadd.f32 (!%p3013_p4), %v4586_v56, %v2532_v10  ;;  %v2535_v17 = vld [vmem:[#allocation2 + $0x160] sm:$0xff] (!%p3013_p4) }
 0x3af   : > { %2478 = vst [vmem:[#allocation2 + $0x1b8] sm:$0xff] %v2414_v18  ;;  %v2583_v18 = vadd.f32 (!%p3013_p4), %v4582_v55, %v2507_v25  ;;  %2645 = vst [vmem:[%s4036_s8 + $0x70] sm:$0xff] (!%p3013_p4), %v2581_v30  ;;  %v2533_v12 = vld [vmem:[#allocation2 + $0x150] sm:$0xff] (!%p3013_p4)  ;;  %v2536_v24 = vld [vmem:[#allocation2 + $0x168] sm:$0xff] (!%p3013_p4)  ;;  %v2611_v26 = vadd.f32 (!%p3013_p4), %v4582_v55, %v2535_v17 }
 0x3b0   : > { %2646 = vst [vmem:[%s4036_s8 + $0x78] sm:$0xff] (!%p3013_p4), %v2582_v31  ;;  %v2609_v14 = vadd.f32 (!%p3013_p4), %v4582_v55, %v2533_v12  ;;  %v2537_v25 = vld [vmem:[#allocation2 + $0x170] sm:$0xff] (!%p3013_p4)  ;;  %2669 = vst [vmem:[%s4036_s8 + $0x130] sm:$0xff] (!%p3013_p4), %v2605_v3  ;;  %v2612_v27 = vadd.f32 (!%p3013_p4), %v4586_v56, %v2536_v24  ;;  %v2538_v31 = vld [vmem:[#allocation2 + $0x178] sm:$0xff] (!%p3013_p4) }
 0x3b1   : > { %v2340_v34 = vpop.f32.mrb[56].mxu0  ;;  %2647 = vst [vmem:[%s4036_s8 + $0x80] sm:$0xff] (!%p3013_p4), %v2583_v18  ;;  %2670 = vst [vmem:[%s4036_s8 + $0x138] sm:$0xff] (!%p3013_p4), %v2606_v6  ;;  %v2613_v30 = vadd.f32 (!%p3013_p4), %v4582_v55, %v2537_v25 }
 0x3b2   : > { %v2415_v35 = vadd.f32 %v2340_v34, %v1517_v20  ;;  %v2342_v50 = vpop.f32.mrb[57].mxu0  ;;  %v2584_v20 = vadd.f32 (!%p3013_p4), %v4586_v56, %v2508_v16  ;;  %v2586_v34 = vadd.f32 (!%p3013_p4), %v4586_v56, %v2510_v8  ;;  %2671 = vst [vmem:[%s4036_s8 + $0x140] sm:$0xff] (!%p3013_p4), %v2607_v9  ;;  %v2539_v16 = vld [vmem:[#allocation2 + $0x180] sm:$0xff] (!%p3013_p4)  ;;  %2672 = vst [vmem:[%s4036_s8 + $0x148] sm:$0xff] (!%p3013_p4), %v2608_v13 }
 0x3b3   : > { %v2416_v4 = vadd.f32 %v2342_v50, %v1518_v21  ;;  %v2344_v5 = vpop.f32.mrb[58].mxu0  ;;  %v2585_v21 = vadd.f32 (!%p3013_p4), %v4582_v55, %v2509_v7  ;;  %v2513_v50 = vld [vmem:[#allocation2 + $0xb0] sm:$0xff] (!%p3013_p4)  ;;  %v2540_v7 = vld [vmem:[#allocation2 + $0x188] sm:$0xff] (!%p3013_p4)  ;;  %2673 = vst [vmem:[%s4036_s8 + $0x150] sm:$0xff] (!%p3013_p4), %v2609_v14  ;;  %2674 = vst [vmem:[%s4036_s8 + $0x158] sm:$0xff] (!%p3013_p4), %v2610_v15  ;;  %v2614_v8 = vadd.f32 (!%p3013_p4), %v4586_v56, %v2538_v31 }
 0x3b4   : > { %2479 = vst [vmem:[#allocation2 + $0x1c0] sm:$0xff] %v2415_v35  ;;  %v2417_v22 = vadd.f32 %v2344_v5, %v1519_v19  ;;  %v2346_v23 = vpop.f32.mrb[59].mxu0  ;;  %v2511_v19 = vld [vmem:[#allocation2 + $0xa0] sm:$0xff] (!%p3013_p4)  ;;  %v2512_v35 = vld [vmem:[#allocation2 + $0xa8] sm:$0xff] (!%p3013_p4)  ;;  %v2589_v5 = vadd.f32 (!%p3013_p4), %v4582_v55, %v2513_v50  ;;  %2648 = vst [vmem:[%s4036_s8 + $0x88] sm:$0xff] (!%p3013_p4), %v2584_v20  ;;  %v2615_v18 = vadd.f32 (!%p3013_p4), %v4582_v55, %v2539_v16 }
 0x3b5   : > { %2480 = vst [vmem:[#allocation2 + $0x1c8] sm:$0xff] %v2416_v4  ;;  %v2418_v32 = vadd.f32 %v2346_v23, %v1520_v51  ;;  %v2587_v51 = vadd.f32 (!%p3013_p4), %v4582_v55, %v2511_v19  ;;  %v2588_v4 = vadd.f32 (!%p3013_p4), %v4586_v56, %v2512_v35  ;;  %v2515_v23 = vld [vmem:[#allocation2 + $0xc0] sm:$0xff] (!%p3013_p4)  ;;  %2649 = vst [vmem:[%s4036_s8 + $0x90] sm:$0xff] (!%p3013_p4), %v2585_v21  ;;  %v2541_v21 = vld [vmem:[#allocation2 + $0x190] sm:$0xff] (!%p3013_p4) }
 0x3b6   : > { %2481 = vst [vmem:[#allocation2 + $0x1d0] sm:$0xff] %v2417_v22  ;;  %v2514_v22 = vld [vmem:[#allocation2 + $0xb8] sm:$0xff] (!%p3013_p4)  ;;  %2650 = vst [vmem:[%s4036_s8 + $0x98] sm:$0xff] (!%p3013_p4), %v2586_v34  ;;  %v2616_v20 = vadd.f32 (!%p3013_p4), %v4586_v56, %v2540_v7  ;;  %v2543_v19 = vld [vmem:[#allocation2 + $0x1a0] sm:$0xff] (!%p3013_p4)  ;;  %v2617_v35 = vadd.f32 (!%p3013_p4), %v4582_v55, %v2541_v21 }
 0x3b7   : > { %2482 = vst [vmem:[#allocation2 + $0x1d8] sm:$0xff] %v2418_v32  ;;  %v2516_v32 = vld [vmem:[#allocation2 + $0xc8] sm:$0xff] (!%p3013_p4)  ;;  %2651 = vst [vmem:[%s4036_s8 + $0xa0] sm:$0xff] (!%p3013_p4), %v2587_v51  ;;  %v2542_v34 = vld [vmem:[#allocation2 + $0x198] sm:$0xff] (!%p3013_p4)  ;;  %v2619_v51 = vadd.f32 (!%p3013_p4), %v4582_v55, %v2543_v19 }
 0x3b8   : > { %2652 = vst [vmem:[%s4036_s8 + $0xa8] sm:$0xff] (!%p3013_p4), %v2588_v4  ;;  %2653 = vst [vmem:[%s4036_s8 + $0xb0] sm:$0xff] (!%p3013_p4), %v2589_v5  ;;  %v2618_v50 = vadd.f32 (!%p3013_p4), %v4586_v56, %v2542_v34  ;;  %v2544_v4 = vld [vmem:[#allocation2 + $0x1a8] sm:$0xff] (!%p3013_p4)  ;;  %v2545_v5 = vld [vmem:[#allocation2 + $0x1b0] sm:$0xff] (!%p3013_p4) }
 0x3b9   : > { %v2350_v38 = vpop.f32.mrb[60].mxu0  ;;  %2490 = sbr.rel (%p3013_p4) target bundleno = 970 (0x3ca), region = 64  ;;  %2675 = vst [vmem:[%s4036_s8 + $0x160] sm:$0xff] (!%p3013_p4), %v2611_v26  ;;  %2676 = vst [vmem:[%s4036_s8 + $0x168] sm:$0xff] (!%p3013_p4), %v2612_v27 }
 0x3ba   : > { %v2419_v40 = vadd.f32 %v2350_v38, %v1521_v33  ;;  %v2352_v28 = vpop.f32.mrb[61].mxu0  ;;  %v2590_v33 = vadd.f32 (!%p3013_p4), %v4586_v56, %v2514_v22  ;;  %v2592_v38 = vadd.f32 (!%p3013_p4), %v4586_v56, %v2516_v32  ;;  %2677 = vst [vmem:[%s4036_s8 + $0x170] sm:$0xff] (!%p3013_p4), %v2613_v30  ;;  %v2546_v22 = vld [vmem:[#allocation2 + $0x1b8] sm:$0xff] (!%p3013_p4)  ;;  %2678 = vst [vmem:[%s4036_s8 + $0x178] sm:$0xff] (!%p3013_p4), %v2614_v8 }
 0x3bb   : > { %v2420_v44 = vadd.f32 %v2352_v28, %v1522_v37  ;;  %v2354_v45 = vpop.f32.mrb[62].mxu0  ;;  %v2591_v37 = vadd.f32 (!%p3013_p4), %v4582_v55, %v2515_v23  ;;  %v2519_v28 = vld [vmem:[#allocation2 + $0xe0] sm:$0xff] (!%p3013_p4)  ;;  %2679 = vst [vmem:[%s4036_s8 + $0x180] sm:$0xff] (!%p3013_p4), %v2615_v18  ;;  %2680 = vst [vmem:[%s4036_s8 + $0x188] sm:$0xff] (!%p3013_p4), %v2616_v20  ;;  %v2620_v23 = vadd.f32 (!%p3013_p4), %v4586_v56, %v2544_v4 }
 0x3bc   : > { %2483 = vst [vmem:[#allocation2 + $0x1e0] sm:$0xff] %v2419_v40  ;;  %v2421_v29 = vadd.f32 %v2354_v45, %v1523_v39  ;;  %v2356_v47 = vpop.f32.mrb[63].mxu0  ;;  %v2517_v39 = vld [vmem:[#allocation2 + $0xd0] sm:$0xff] (!%p3013_p4)  ;;  %v2518_v40 = vld [vmem:[#allocation2 + $0xd8] sm:$0xff] (!%p3013_p4)  ;;  %v2595_v45 = vadd.f32 (!%p3013_p4), %v4582_v55, %v2519_v28  ;;  %2654 = vst [vmem:[%s4036_s8 + $0xb8] sm:$0xff] (!%p3013_p4), %v2590_v33  ;;  %v2621_v32 = vadd.f32 (!%p3013_p4), %v4582_v55, %v2545_v5 }
 0x3bd   : > { %2484 = vst [vmem:[#allocation2 + $0x1e8] sm:$0xff] %v2420_v44  ;;  %v2422_v46 = vadd.f32 %v2356_v47, %v1524_v42  ;;  %v2593_v42 = vadd.f32 (!%p3013_p4), %v4582_v55, %v2517_v39  ;;  %v2594_v44 = vadd.f32 (!%p3013_p4), %v4586_v56, %v2518_v40  ;;  %v2521_v47 = vld [vmem:[#allocation2 + $0xf0] sm:$0xff] (!%p3013_p4)  ;;  %2655 = vst [vmem:[%s4036_s8 + $0xc0] sm:$0xff] (!%p3013_p4), %v2591_v37  ;;  %v2547_v37 = vld [vmem:[#allocation2 + $0x1c0] sm:$0xff] (!%p3013_p4) }
 0x3be   : > { %2485 = vst [vmem:[#allocation2 + $0x1f0] sm:$0xff] %v2421_v29  ;;  %v2520_v29 = vld [vmem:[#allocation2 + $0xe8] sm:$0xff] (!%p3013_p4)  ;;  %2656 = vst [vmem:[%s4036_s8 + $0xc8] sm:$0xff] (!%p3013_p4), %v2592_v38  ;;  %v2597_v53 = vadd.f32 (!%p3013_p4), %v4582_v55, %v2521_v47  ;;  %v2622_v33 = vadd.f32 (!%p3013_p4), %v4586_v56, %v2546_v22  ;;  %v2549_v39 = vld [vmem:[#allocation2 + $0x1d0] sm:$0xff] (!%p3013_p4)  ;;  %v2623_v40 = vadd.f32 (!%p3013_p4), %v4582_v55, %v2547_v37 }
 0x3bf   : > { %2486 = vst [vmem:[#allocation2 + $0x1f8] sm:$0xff] %v2422_v46  ;;  %v2522_v46 = vld [vmem:[#allocation2 + $0xf8] sm:$0xff] (!%p3013_p4)  ;;  %v2596_v48 = vadd.f32 (!%p3013_p4), %v4586_v56, %v2520_v29  ;;  %2657 = vst [vmem:[%s4036_s8 + $0xd0] sm:$0xff] (!%p3013_p4), %v2593_v42  ;;  %v2548_v38 = vld [vmem:[#allocation2 + $0x1c8] sm:$0xff] (!%p3013_p4)  ;;  %v2625_v42 = vadd.f32 (!%p3013_p4), %v4582_v55, %v2549_v39 }
 0x3c0   : > { %v2598_v49 = vadd.f32 %v4586_v56, %v2522_v46  ;;  %2658 = vst [vmem:[%s4036_s8 + $0xd8] sm:$0xff] %v2594_v44  ;;  %2659 = vst [vmem:[%s4036_s8 + $0xe0] sm:$0xff] %v2595_v45  ;;  %v2624_v28 = vadd.f32 %v4586_v56, %v2548_v38  ;;  %v2550_v44 = vld [vmem:[#allocation2 + $0x1d8] sm:$0xff] }
 0x3c1   : > { %2660 = vst [vmem:[%s4036_s8 + $0xe8] sm:$0xff] %v2596_v48  ;;  %2661 = vst [vmem:[%s4036_s8 + $0xf0] sm:$0xff] %v2597_v53  ;;  %v2626_v47 = vadd.f32 %v4586_v56, %v2550_v44 }
 0x3c2   : > { %2662 = vst [vmem:[%s4036_s8 + $0xf8] sm:$0xff] %v2598_v49  ;;  %2681 = vst [vmem:[%s4036_s8 + $0x190] sm:$0xff] %v2617_v35 }
 0x3c3   : > { %2682 = vst [vmem:[%s4036_s8 + $0x198] sm:$0xff] %v2618_v50  ;;  %2683 = vst [vmem:[%s4036_s8 + $0x1a0] sm:$0xff] %v2619_v51  ;;  %v2551_v45 = vld [vmem:[#allocation2 + $0x1e0] sm:$0xff] }
 0x3c4   : > { %v2552_v29 = vld [vmem:[#allocation2 + $0x1e8] sm:$0xff]  ;;  %2684 = vst [vmem:[%s4036_s8 + $0x1a8] sm:$0xff] %v2620_v23  ;;  %2685 = vst [vmem:[%s4036_s8 + $0x1b0] sm:$0xff] %v2621_v32  ;;  %v2627_v46 = vadd.f32 %v4582_v55, %v2551_v45 }
 0x3c5   : > { %2686 = vst [vmem:[%s4036_s8 + $0x1b8] sm:$0xff] %v2622_v33  ;;  %v2628_v48 = vadd.f32 %v4586_v56, %v2552_v29  ;;  %v2553_v53 = vld [vmem:[#allocation2 + $0x1f0] sm:$0xff]  ;;  %2687 = vst [vmem:[%s4036_s8 + $0x1c0] sm:$0xff] %v2623_v40 }
 0x3c6   : > { %v2554_v49 = vld [vmem:[#allocation2 + $0x1f8] sm:$0xff]  ;;  %2688 = vst [vmem:[%s4036_s8 + $0x1c8] sm:$0xff] %v2624_v28  ;;  %2689 = vst [vmem:[%s4036_s8 + $0x1d0] sm:$0xff] %v2625_v42  ;;  %v2629_v57 = vadd.f32 %v4582_v55, %v2553_v53 }
 0x3c7   : > { %v2630_v58 = vadd.f32 %v4586_v56, %v2554_v49  ;;  %2690 = vst [vmem:[%s4036_s8 + $0x1d8] sm:$0xff] %v2626_v47  ;;  %2691 = vst [vmem:[%s4036_s8 + $0x1e0] sm:$0xff] %v2627_v46 }
 0x3c8   : > { %2692 = vst [vmem:[%s4036_s8 + $0x1e8] sm:$0xff] %v2628_v48  ;;  %2693 = vst [vmem:[%s4036_s8 + $0x1f0] sm:$0xff] %v2629_v57 }
 0x3c9   : > { %2694 = vst [vmem:[%s4036_s8 + $0x1f8] sm:$0xff] %v2630_v58 }
 0x3ca PF: > { %s4846_s24 = sld [smem:[#allocation18_spill]]  ;;  %s2710_s13 = sshll.u32 %s4036_s8, 4  ;;  %s4723_s13 = int_to_ptr.vmem [resolvable:$true] %s2710_s13 }
 0x3cb   : > { %s4847_s20 = sld [smem:[#allocation27_spill]]  ;;  %s2696_s6 = scalar_lea.sflag [#allocation5], %s4010_s17 }
 0x3cc   : > { %s3529_s14 = scalar_lea.vmem %s4723_s13, 8192  ;;  %p4849_p11 = scmp.ne.s32.totalorder %s4832_s12, 0 }
 0x3cd   : > { %p3530_p12 = scmp.ne.s32.totalorder %s4723_s13, %s3529_s14  ;;  %s3671_s30 = smov [#allocation11]  }
 0x3ce   : > { %s3533_s11 = sshll.u32 %s3671_s30, 4  ;;  %s3534_s11 = int_to_ptr.vmem [resolvable:$false] %s3533_s11 }
 0x3cf   : > { %p3531_p5 = pnand %p3530_p12, %p4849_p11  ;;  %s3535_s4 = scalar_lea.vmem %s3534_s11, 16384 }
 0x3d0   : > { %s3027_s5 = sshll.u32 %s4846_s24, 13  ;;  %p3536_p9 = scmp.lt.s32.totalorder %s4723_s13, %s3534_s11 }
 0x3d1   : > { %s4848_s15 = smov %s4847_s20  ;;  %s4720_s16 = scalar_lea.hbm %s4847_s20, %s3027_s5 }
 0x3d2   : > { %p3532_p3 = pneg %p3531_p5  ;;  %p3537_p2 = scmp.lt.s32.totalorder %s3535_s4, %s3529_s14 }
 0x3d4   : > { %p3538_p0 = por %p3537_p2, %p3536_p9 }
 0x3d6   : > { %p3539_p10 = pnand %p3538_p0, %p3532_p3 }
 0x3d8   : > { %3542 = shalt.err (!%p3539_p10)
}
 0x3d9   : > { %s3543_s27 = scalar_lea.hbm %s4720_s16, 8192  ;;  %s3547_s29 = scalar_lea.hbm %s4848_s15, 16384 }
 0x3da   : > { %p3544_p7 = scmp.ne.s32.totalorder %s4720_s16, %s3543_s27  ;;  %p3548_p13 = scmp.lt.u32.totalorder %s4720_s16, %s4848_s15 }
 0x3db   : > { %p3549_p6 = scmp.lt.u32.totalorder %s3547_s29, %s3543_s27  ;;  %p3551_p12 = scmp.lt.u32.totalorder %s3543_s27, %s4720_s16 }
 0x3dc   : > { %p3545_p8 = pnand %p3544_p7, %p4849_p11 }
 0x3dd   : > { %p3550_p4 = por %p3549_p6, %p3548_p13 }
 0x3de   : > { %p3546_p1 = pneg %p3545_p8 }
 0x3df   : > { %p3552_p5 = por %p3551_p12, %p3550_p4 }
 0x3e1   : > { %p3553_p3 = pnand %p3552_p5, %p3546_p1 }
 0x3e3   : > { %3556 = shalt.err (!%p3553_p3)
}
 0x3e4   : > { %s3672_s7 = smov 256   ;;  %s3673_s23 = smov 16  }
 0x3e5   : > { %3100 = dma.vmem_to_hbm [thread:$0]  (%p4849_p11), %s4723_s13, 8192, %s4720_s16, %s2696_s6, %s3672_s7, %s3672_s7, %s3673_s23  }
 0x3e6 PF: > { %s4850_s24 = sld [smem:[#allocation24_spill]]  ;;  %p3120_p9 = scmp.ge.s32.totalorder %s3659_s28, 2 }
 0x3e7   : > { %s2725_s5 = sand.u32 1, %s3631_s21  }
 0x3e8   : > { %s2726_s1 = scalar_lea.sflag [#allocation5], %s2725_s5 }
 0x3ec   : > { %p4851_p2 = scmp.ne.s32.totalorder %s4850_s24, 0 }
 0x3ee   : > { %p3116_p0 = pnand %p3120_p9, %p4851_p2 }
 0x3f0   : > { %3614 = dma.done.wait (!%p3116_p0), %s2726_s1, 8192  }
 0x3f1   : > { %3616 = vsyncadd (!%p3116_p0), %s2726_s1, 4294959104  ;;  %s27_s28 = sadd.s32 1, %s3659_s28   ;;  %s4852_s20 = sld [smem:[#allocation16_spill]] }
 0x3f2   : > { %p24_p10 = scmp.ge.s32.totalorder %s27_s28, 6   ;;  %s4853_s14 = sld [smem:[#allocation22_spill]] }
 0x3f3   : > { %s4854_s12 = sld [smem:[#allocation17_spill]]  ;;  %s4855_s23 = sld [smem:[#allocation23_spill]] }
 0x3f4   : > { %s4856_s25 = sld [smem:[#allocation19_spill]]  ;;  %s4857_s17 = sld [smem:[#allocation20_spill]] }
 0x3f5   : > { %s4858_s27 = sld [smem:[#allocation21_spill]]  ;;  %s4859_s18 = smov %s3623_s19 }
 0x3f6   : > { %s4862_s21 = smov %s3635_s22  ;;  %s4864_s24 = smov %s3651_s26 }
 0x3f7   : > { %s4860_s19 = smov %s4852_s20  ;;  %26 = sbr.rel (!%p24_p10) target bundleno = 17 (0x11), region = 130 }
 0x3f8   : > { %s4861_s20 = smov %s4853_s14 }
 0x3f9   : > { %s4863_s22 = smov %s4854_s12 }
 0x3fa   : > { %s4865_s26 = smov %s4857_s17 }
 0x3fe   :  { %2731 = vsyncpa [#allocation4], 1 }
 0x3ff   :  { %2733 = vsyncpa [#allocation4 + $0x1], 1 }
 0x400   :  { %2734 = vsyncpa [#allocation7], 1 }
 0x401   :  { %2736 = vsyncpa [#allocation7 + $0x1], 1 }
 0x402   :  { %2737 = vsyncpa [#allocation10], 1 }
 0x403   :  { %2739 = vsyncpa [#allocation10 + $0x1], 1 }
 0x404   :  { %2740 = vsyncpa [#allocation5], 1 }
 0x405   :  { %2742 = vsyncpa [#allocation5 + $0x1], 1 }

</bundles_post_ra>
